<compile_context>
chip_gen: v6e
topology: v6e:2x2x1
jax: 0.10.0
libtpu: 0.0.40
codegen_flags: <defaults>
</compile_context>

<pallas_src>
import functools

import jax
import jax.numpy as jnp
from jax.experimental import pallas as pl
from jax.experimental.pallas import tpu as pltpu


# MXU input dtype.  bf16 halves weight HBM/VMEM bytes and gives the native MXU
# throughput on v6e/v7x; accumulation stays f32 (preferred_element_type) and
# all softmax / LayerNorm / residual math stays f32.  Use jnp.float32 here for
# exact numerical parity with the PyTorch reference.
MATMUL_DTYPE = jnp.bfloat16
PARAM_DTYPE = MATMUL_DTYPE       # storage dtype of matmul weights in HBM

_EPS = 1e-5


def _vmem_limit_bytes():
    """Generation-aware scoped-VMEM limit: ~3/4 of physical VMEM
    (≈96 MiB on v5e/v6e's 128 MiB, ≈48 MiB on v7x's 64 MiB)."""
    try:
        cap = pltpu.get_tpu_info().vmem_capacity_bytes
    except Exception:  # query unavailable — fall back to a safe value
        cap = 64 * 1024 * 1024
    return min(int(cap) * 3 // 4, 112 * 1024 * 1024)


_COMPILER_PARAMS = pltpu.CompilerParams(
    dimension_semantics=("parallel",),
    vmem_limit_bytes=_vmem_limit_bytes(),
)


# ----------------------------------------------------------------------------
# small helpers
# ----------------------------------------------------------------------------
def _cost(flops, transcendentals, bytes_accessed):
    return pl.CostEstimate(flops=int(flops), transcendentals=int(transcendentals),
                           bytes_accessed=int(bytes_accessed))


def _nbytes(*arrays):
    return sum(int(a.size) * a.dtype.itemsize for a in arrays)


def _layernorm(y, gamma, beta, eps):
    mu = jnp.mean(y, axis=-1, keepdims=True)
    var = jnp.mean(jnp.square(y - mu), axis=-1, keepdims=True)
    return (y - mu) * jax.lax.rsqrt(var + eps) * gamma + beta


def _row_tile(n, max_rows=512):
    """Row tile for the token-parallel kernels: as large as the VMEM budget
    allows (<= max_rows), a multiple of 8 (sublane), and giving >= 2 grid
    steps whenever n permits so both TensorCores of a megacore / v7x part get
    work.  Callers zero-pad the row dim to a multiple of the tile."""
    if n <= 8:
        return max(n, 1)
    steps = max(2, pl.cdiv(n, max_rows))
    t = ((pl.cdiv(n, steps) + 7) // 8) * 8
    return min(t, n)


def _pad_rows(x, tile):
    pad = (-x.shape[0]) % tile
    if pad:
        x = jnp.pad(x, ((0, pad), (0, 0)))
    return x


# ----------------------------------------------------------------------------
# Pallas kernels
# ----------------------------------------------------------------------------
def _linear_kernel(x_ref, w_ref, b_ref, o_ref):
    y = jnp.dot(x_ref[...].astype(MATMUL_DTYPE), w_ref[...],
                preferred_element_type=jnp.float32) + b_ref[...]
    o_ref[...] = y.astype(o_ref.dtype)


def _attn_block_kernel(h_ref, wqkv_ref, bqkv_ref, wo_ref, bo_ref,
                       g_ref, beta_ref, o_ref, *, num_heads, head_dim, eps):
    """One batch element per grid step: LN1(h + MHA(h)).  h block: (1, S, E).

    All heads' Q|K|V come from ONE lane-dense (S,E)@(E,3E) matmul, and the
    out-projection is ONE (S,E)@(E,E) matmul on the concatenated head
    contexts, so the MXU never sees an N=Dh or K=Dh matmul.
    """
    h = h_ref[0].astype(jnp.float32)                          # (S, E)
    s_len, e_dim = h.shape
    scale = 1.0 / float(head_dim) ** 0.5

    hm = h.astype(MATMUL_DTYPE)                               # single hoisted cast
    qkv = jnp.dot(hm, wqkv_ref[...],
                  preferred_element_type=jnp.float32) + bqkv_ref[...]   # (S, 3E)

    # Per-head SDPA on static Dh-wide slices of the packed projection.
    # NOTE: the (S, S) score matrix is materialized per head; for long
    # sequences switch to flash-style KV tiling (online softmax over KV tiles)
    # to bound VMEM to O(S*Dh + tq*tk).
    ctxs = []
    for hh in range(num_heads):
        lo = hh * head_dim
        q = (qkv[:, lo:lo + head_dim] * scale).astype(MATMUL_DTYPE)
        k = qkv[:, e_dim + lo:e_dim + lo + head_dim].astype(MATMUL_DTYPE)
        v = qkv[:, 2 * e_dim + lo:2 * e_dim + lo + head_dim].astype(MATMUL_DTYPE)
        s = jax.lax.dot_general(q, k, (((1,), (1,)), ((), ())),
                                preferred_element_type=jnp.float32)      # (S, S)
        m = jnp.max(s, axis=-1, keepdims=True)
        p = jnp.exp(s - m)
        l = jnp.sum(p, axis=-1, keepdims=True)
        # Deferred softmax normalization: one exact divide of the (S, Dh)
        # context instead of the (S, S) probability matrix.
        ctx = jnp.dot(p.astype(MATMUL_DTYPE), v,
                      preferred_element_type=jnp.float32) / l
        ctxs.append(ctx)

    ctx_all = jnp.concatenate(ctxs, axis=-1)                  # (S, E)
    attn = jnp.dot(ctx_all.astype(MATMUL_DTYPE), wo_ref[...],
                   preferred_element_type=jnp.float32) + bo_ref[...]
    y = h + attn                                              # residual
    o_ref[0] = _layernorm(y, g_ref[...], beta_ref[...], eps).astype(o_ref.dtype)


def _ffn_block_kernel(h_ref, w1_ref, b1_ref, w2_ref, b2_ref, g_ref, beta_ref,
                      o_ref, *, eps):
    """Row tile of tokens: LN2(h + linear2(relu(linear1(h)))).  h block: (TN, E)."""
    h = h_ref[...].astype(jnp.float32)
    f = jnp.maximum(jnp.dot(h.astype(MATMUL_DTYPE), w1_ref[...],
                            preferred_element_type=jnp.float32) + b1_ref[...], 0.0)
    y = h + jnp.dot(f.astype(MATMUL_DTYPE), w2_ref[...],
                    preferred_element_type=jnp.float32) + b2_ref[...]
    o_ref[...] = _layernorm(y, g_ref[...], beta_ref[...], eps).astype(o_ref.dtype)


# ----------------------------------------------------------------------------
# pallas_call wrappers
# ----------------------------------------------------------------------------
def linear(x, w, b, *, lane_pad=False):
    """y = x @ w + b.  x: (N, K) f32, w: (K, M), b: (1, M) f32.

    lane_pad=True pads M up to a multiple of 128 (unmasked lane-dense stores)
    and slices in the wrapper — used for the decoder projection whose output
    dim (input_channels) is typically < 128.
    """
    n0, k = x.shape
    m0 = w.shape[1]
    m = m0
    if lane_pad and m0 % 128:
        m = ((m0 + 127) // 128) * 128
        w = jnp.pad(w, ((0, 0), (0, m - m0)))
        b = jnp.pad(b, ((0, 0), (0, m - m0)))
    tn = _row_tile(n0)
    x = _pad_rows(x, tn)
    n = x.shape[0]
    out = pl.pallas_call(
        _linear_kernel,
        out_shape=jax.ShapeDtypeStruct((n, m), jnp.float32),
        grid=(n // tn,),
        in_specs=[
            pl.BlockSpec((tn, k), lambda i: (i, 0)),
            pl.BlockSpec((k, m), lambda i: (0, 0)),
            pl.BlockSpec((1, m), lambda i: (0, 0)),
        ],
        out_specs=pl.BlockSpec((tn, m), lambda i: (i, 0)),
        compiler_params=_COMPILER_PARAMS,
        cost_estimate=_cost(2 * n * k * m, 0, _nbytes(x, w, b) + n * m * 4),
    )(x, w, b)
    return out[:n0, :m0]


def attention_block(h, lp, num_heads):
    """h: (B, S, E) f32 -> LayerNorm1(h + SelfAttention(h)), (B, S, E) f32."""
    bsz, s_len, e_dim = h.shape
    head_dim = e_dim // num_heads
    kernel = functools.partial(_attn_block_kernel, num_heads=num_heads,
                               head_dim=head_dim, eps=_EPS)
    c2 = lambda i: (0, 0)
    flops = bsz * (6 * s_len * e_dim * e_dim          # packed QKV projection
                   + 4 * s_len * s_len * e_dim        # QK^T + PV over all heads
                   + 2 * s_len * e_dim * e_dim)       # out-projection
    wbytes = _nbytes(lp["w_qkv"], lp["b_qkv"], lp["wo"], lp["bo"],
                     lp["norm1_g"], lp["norm1_b"])
    return pl.pallas_call(
        kernel,
        out_shape=jax.ShapeDtypeStruct((bsz, s_len, e_dim), jnp.float32),
        grid=(bsz,),
        in_specs=[
            pl.BlockSpec((1, s_len, e_dim), lambda i: (i, 0, 0)),   # h
            pl.BlockSpec((e_dim, 3 * e_dim), c2),                   # packed QKV weight
            pl.BlockSpec((1, 3 * e_dim), c2),                       # packed QKV bias
            pl.BlockSpec((e_dim, e_dim), c2),                       # out-proj weight
            pl.BlockSpec((1, e_dim), c2),                           # out-proj bias
            pl.BlockSpec((1, e_dim), c2),                           # norm1 gamma
            pl.BlockSpec((1, e_dim), c2),                           # norm1 beta
        ],
        out_specs=pl.BlockSpec((1, s_len, e_dim), lambda i: (i, 0, 0)),
        compiler_params=_COMPILER_PARAMS,
        cost_estimate=_cost(flops, bsz * num_heads * s_len * s_len,
                            wbytes + 2 * bsz * s_len * e_dim * 4),
    )(h, lp["w_qkv"], lp["b_qkv"], lp["wo"], lp["bo"],
      lp["norm1_g"], lp["norm1_b"])


def ffn_block(h2d, lp):
    """h2d: (N, E) f32 -> LayerNorm2(h + FFN(h)), (N, E) f32."""
    n0, e_dim = h2d.shape
    ff = lp["lin1_w"].shape[1]
    tn = _row_tile(n0)
    h2d = _pad_rows(h2d, tn)
    n = h2d.shape[0]
    kernel = functools.partial(_ffn_block_kernel, eps=_EPS)
    wbytes = _nbytes(lp["lin1_w"], lp["lin1_b"], lp["lin2_w"], lp["lin2_b"],
                     lp["norm2_g"], lp["norm2_b"])
    # NOTE: for very large E/FF on v7x, add a K-reduction grid axis over FF
    # (semantics ("parallel","arbitrary")) with a VMEM f32 accumulator and
    # single-buffered weight specs so only (E,tk)+(tk,E) slabs are resident.
    out = pl.pallas_call(
        kernel,
        out_shape=jax.ShapeDtypeStruct((n, e_dim), jnp.float32),
        grid=(n // tn,),
        in_specs=[
            pl.BlockSpec((tn, e_dim), lambda i: (i, 0)),
            pl.BlockSpec((e_dim, ff), lambda i: (0, 0)),
            pl.BlockSpec((1, ff), lambda i: (0, 0)),
            pl.BlockSpec((ff, e_dim), lambda i: (0, 0)),
            pl.BlockSpec((1, e_dim), lambda i: (0, 0)),
            pl.BlockSpec((1, e_dim), lambda i: (0, 0)),
            pl.BlockSpec((1, e_dim), lambda i: (0, 0)),
        ],
        out_specs=pl.BlockSpec((tn, e_dim), lambda i: (i, 0)),
        compiler_params=_COMPILER_PARAMS,
        cost_estimate=_cost(4 * n * e_dim * ff, 0,
                            wbytes + 2 * n * e_dim * 4),
    )(h2d, lp["lin1_w"], lp["lin1_b"], lp["lin2_w"], lp["lin2_b"],
      lp["norm2_g"], lp["norm2_b"])
    return out[:n0]


# ----------------------------------------------------------------------------
# Model forward (glue is only free contiguous reshapes; no transposes)
# ----------------------------------------------------------------------------
@functools.partial(jax.jit, static_argnames=("num_heads", "encoder_only"))
def transformer_autoencoder_forward(x, params, *, num_heads, encoder_only=False):
    """x: (B, S, C) float32 — mirrors the PyTorch module's forward().

    The PyTorch module permutes to seq-major (S, B, E) only because its
    TransformerEncoder defaults to batch_first=False; per-batch self-attention
    is layout-independent, so everything here runs batch-major / token-
    flattened with zero transposes.
    """
    bsz, s_len, c_in = x.shape
    e_dim = params["embed_w"].shape[1]

    # embedding Linear(C -> E), token-parallel on the flattened (B*S, C) view.
    h = linear(x.reshape(bsz * s_len, c_in), params["embed_w"], params["embed_b"])

    for lp in params["layers"]:
        h = attention_block(h.reshape(bsz, s_len, e_dim), lp, num_heads)
        h = ffn_block(h.reshape(bsz * s_len, e_dim), lp)

    h = h.reshape(bsz, s_len, e_dim)
    if encoder_only:
        # PyTorch: encoder output is (S, B, E); x[-1, :, :] == last seq position.
        return h[:, -1, :]                                    # (B, E)

    # decoder Linear(E -> C): lane-dense padded output, sliced in the wrapper.
    y = linear(h.reshape(bsz * s_len, e_dim), params["dec_w"], params["dec_b"],
               lane_pad=True)
    return y.reshape(bsz, s_len, c_in)                        # (B, S, C)


# ----------------------------------------------------------------------------
# Deterministic synthetic parameters
# ----------------------------------------------------------------------------
def init_params(key, input_channels, embedding_dim, num_heads, num_layers, dim_ff):
    c_in, e_dim, ff = input_channels, embedding_dim, dim_ff
    scale = 0.02

    def w(k, shape):
        return (scale * jax.random.normal(k, shape)).astype(PARAM_DTYPE)

    keys = jax.random.split(key, 2 + num_layers)
    params = {
        "embed_w": w(keys[0], (c_in, e_dim)),
        "embed_b": jnp.zeros((1, e_dim), jnp.float32),
        "dec_w": w(keys[1], (e_dim, c_in)),
        "dec_b": jnp.zeros((1, c_in), jnp.float32),
        "layers": [],
    }
    for li in range(num_layers):
        lk = jax.random.split(keys[2 + li], 4)
        params["layers"].append({
            # combined QKV in-projection packed lane-dense as (E, 3E):
            # columns [0,E)=Q (heads consecutive, Dh each), [E,2E)=K, [2E,3E)=V.
            "w_qkv": w(lk[0], (e_dim, 3 * e_dim)),
            "b_qkv": jnp.zeros((1, 3 * e_dim), jnp.float32),
            # out-projection kept whole: one (E, E) matmul on concatenated heads.
            "wo": w(lk[1], (e_dim, e_dim)),
            "bo": jnp.zeros((1, e_dim), jnp.float32),
            "norm1_g": jnp.ones((1, e_dim), jnp.float32),
            "norm1_b": jnp.zeros((1, e_dim), jnp.float32),
            "lin1_w": w(lk[2], (e_dim, ff)),
            "lin1_b": jnp.zeros((1, ff), jnp.float32),
            "lin2_w": w(lk[3], (ff, e_dim)),
            "lin2_b": jnp.zeros((1, e_dim), jnp.float32),
            "norm2_g": jnp.ones((1, e_dim), jnp.float32),
            "norm2_b": jnp.zeros((1, e_dim), jnp.float32),
        })
    return params


# ----------------------------------------------------------------------------
if __name__ == "__main__":
    # Small, self-consistent shapes (module defaults scaled down):
    B, S, C = 2, 16, 8                 # batch, seq_length, input_channels
    E, H, L, FF = 32, 4, 2, 64         # embedding_dim, heads, layers, dim_feedforward

    key = jax.random.PRNGKey(0)
    kx, kp = jax.random.split(key)
    x = jax.random.normal(kx, (B, S, C), dtype=jnp.float32)
    params = init_params(kp, C, E, H, L, FF)

    out = transformer_autoencoder_forward(x, params, num_heads=H, encoder_only=False)
    out = jax.block_until_ready(out)
    assert out.shape == (B, S, C) and out.dtype == jnp.float32
    assert bool(jnp.all(jnp.isfinite(out)))

    enc_last = transformer_autoencoder_forward(x, params, num_heads=H, encoder_only=True)
    enc_last = jax.block_until_ready(enc_last)
    assert enc_last.shape == (B, E)
    assert bool(jnp.all(jnp.isfinite(enc_last)))

    print("KERNEL_OK")
</pallas_src>

<mosaic_0001>
module attributes {stable_mosaic.version = 11 : i64} {
  func.func @_linear_kernel(%arg0: i32, %arg1: memref<16x8xf32, #tpu.memory_space<vmem>>, %arg2: memref<8x32xbf16, #tpu.memory_space<vmem>>, %arg3: memref<1x32xf32, #tpu.memory_space<vmem>>, %arg4: memref<16x32xf32, #tpu.memory_space<vmem>>) attributes {dimension_semantics = [#tpu.dimension_semantics<parallel>], iteration_bounds = array<i64: 2>, scalar_prefetch = 0 : i64, scratch_operands = 0 : i64, tpu.core_type = #tpu.core_type<tc>, window_params = [{transform_indices = @transform_0, window_bounds = array<i64: 16, 8>}, {pipeline_mode = #tpu.pipeline_mode<synchronous>, transform_indices = @transform_1, window_bounds = array<i64: 8, 32>}, {pipeline_mode = #tpu.pipeline_mode<synchronous>, transform_indices = @transform_2, window_bounds = array<i64: 1, 32>}, {transform_indices = @transform_3, window_bounds = array<i64: 16, 32>}]} {
    %c0 = arith.constant 0 : index
    %c0_0 = arith.constant 0 : index
    %0 = vector.load %arg1[%c0, %c0_0] : memref<16x8xf32, #tpu.memory_space<vmem>>, vector<16x8xf32>
    %1 = arith.truncf %0 : vector<16x8xf32> to vector<16x8xbf16>
    %c0_1 = arith.constant 0 : index
    %c0_2 = arith.constant 0 : index
    %2 = vector.load %arg2[%c0_1, %c0_2] : memref<8x32xbf16, #tpu.memory_space<vmem>>, vector<8x32xbf16>
    %cst = arith.constant dense<0.000000e+00> : vector<16x32xf32>
    %3 = tpu.matmul %1, %2, %cst {dimension_numbers = #tpu.dot_dimension_numbers<[1], [0], [0], [1], [0, 0, 1, 1], [], []>} : vector<16x8xbf16>, vector<8x32xbf16>, vector<16x32xf32> -> vector<16x32xf32>
    %c0_3 = arith.constant 0 : index
    %c0_4 = arith.constant 0 : index
    %4 = vector.load %arg3[%c0_3, %c0_4] : memref<1x32xf32, #tpu.memory_space<vmem>>, vector<1x32xf32>
    %5 = vector.broadcast %4 : vector<1x32xf32> to vector<16x32xf32>
    %6 = arith.addf %3, %5 : vector<16x32xf32>
    %c0_5 = arith.constant 0 : index
    %c0_6 = arith.constant 0 : index
    %7 = vector.load %arg4[%c0_5, %c0_6] : memref<16x32xf32, #tpu.memory_space<vmem>>, vector<16x32xf32>
    tpu.vector_store %arg4[%c0_5, %c0_6], %6 {strides = array<i32>} : memref<16x32xf32, #tpu.memory_space<vmem>>, vector<16x32xf32>,
    return
  }
  func.func @transform_0(%arg0: i32) -> (i32, i32) {
    %c0_i32 = arith.constant 0 : i32
    %c0_i32_0 = arith.constant 0 : i32
    return %arg0, %c0_i32 : i32, i32
  }
  func.func @transform_1(%arg0: i32) -> (i32, i32) {
    %c0_i32 = arith.constant 0 : i32
    %c0_i32_0 = arith.constant 0 : i32
    %c0_i32_1 = arith.constant 0 : i32
    return %c0_i32, %c0_i32_0 : i32, i32
  }
  func.func @transform_2(%arg0: i32) -> (i32, i32) {
    %c0_i32 = arith.constant 0 : i32
    %c0_i32_0 = arith.constant 0 : i32
    %c0_i32_1 = arith.constant 0 : i32
    return %c0_i32, %c0_i32_0 : i32, i32
  }
  func.func @transform_3(%arg0: i32) -> (i32, i32) {
    %c0_i32 = arith.constant 0 : i32
    %c0_i32_0 = arith.constant 0 : i32
    return %arg0, %c0_i32 : i32, i32
  }
}

module attributes {stable_mosaic.version = 11 : i64} {
  func.func @_attn_block_kernel(%arg0: i32, %arg1: memref<1x16x32xf32, #tpu.memory_space<vmem>>, %arg2: memref<32x96xbf16, #tpu.memory_space<vmem>>, %arg3: memref<1x96xf32, #tpu.memory_space<vmem>>, %arg4: memref<32x32xbf16, #tpu.memory_space<vmem>>, %arg5: memref<1x32xf32, #tpu.memory_space<vmem>>, %arg6: memref<1x32xf32, #tpu.memory_space<vmem>>, %arg7: memref<1x32xf32, #tpu.memory_space<vmem>>, %arg8: memref<1x16x32xf32, #tpu.memory_space<vmem>>) attributes {dimension_semantics = [#tpu.dimension_semantics<parallel>], iteration_bounds = array<i64: 2>, scalar_prefetch = 0 : i64, scratch_operands = 0 : i64, tpu.core_type = #tpu.core_type<tc>, window_params = [{transform_indices = @transform_0, window_bounds = array<i64: 1, 16, 32>}, {pipeline_mode = #tpu.pipeline_mode<synchronous>, transform_indices = @transform_1, window_bounds = array<i64: 32, 96>}, {pipeline_mode = #tpu.pipeline_mode<synchronous>, transform_indices = @transform_2, window_bounds = array<i64: 1, 96>}, {pipeline_mode = #tpu.pipeline_mode<synchronous>, transform_indices = @transform_3, window_bounds = array<i64: 32, 32>}, {pipeline_mode = #tpu.pipeline_mode<synchronous>, transform_indices = @transform_4, window_bounds = array<i64: 1, 32>}, {pipeline_mode = #tpu.pipeline_mode<synchronous>, transform_indices = @transform_5, window_bounds = array<i64: 1, 32>}, {pipeline_mode = #tpu.pipeline_mode<synchronous>, transform_indices = @transform_6, window_bounds = array<i64: 1, 32>}, {transform_indices = @transform_7, window_bounds = array<i64: 1, 16, 32>}]} {
    %c0 = arith.constant 0 : index
    %c0_0 = arith.constant 0 : index
    %c0_1 = arith.constant 0 : index
    %0 = vector.load %arg1[%c0, %c0_0, %c0_1] : memref<1x16x32xf32, #tpu.memory_space<vmem>>, vector<1x16x32xf32>
    %1 = vector.shape_cast %0 : vector<1x16x32xf32> to vector<16x32xf32>
    %2 = arith.truncf %1 : vector<16x32xf32> to vector<16x32xbf16>
    %c0_2 = arith.constant 0 : index
    %c0_3 = arith.constant 0 : index
    %3 = vector.load %arg2[%c0_2, %c0_3] : memref<32x96xbf16, #tpu.memory_space<vmem>>, vector<32x96xbf16>
    %cst = arith.constant dense<0.000000e+00> : vector<16x96xf32>
    %4 = tpu.matmul %2, %3, %cst {dimension_numbers = #tpu.dot_dimension_numbers<[1], [0], [0], [1], [0, 0, 1, 1], [], []>} : vector<16x32xbf16>, vector<32x96xbf16>, vector<16x96xf32> -> vector<16x96xf32>
    %c0_4 = arith.constant 0 : index
    %c0_5 = arith.constant 0 : index
    %5 = vector.load %arg3[%c0_4, %c0_5] : memref<1x96xf32, #tpu.memory_space<vmem>>, vector<1x96xf32>
    %6 = vector.broadcast %5 : vector<1x96xf32> to vector<16x96xf32>
    %7 = arith.addf %4, %6 : vector<16x96xf32>
    %8 = vector.extract_strided_slice %7 {offsets = [0, 0], sizes = [16, 8], strides = [1, 1]} : vector<16x96xf32> to vector<16x8xf32>
    %cst_6 = arith.constant 0.353553385 : f32
    %9 = vector.broadcast %cst_6 : f32 to vector<16x8xf32>
    %10 = arith.mulf %8, %9 : vector<16x8xf32>
    %11 = arith.truncf %10 : vector<16x8xf32> to vector<16x8xbf16>
    %12 = vector.extract_strided_slice %7 {offsets = [0, 32], sizes = [16, 8], strides = [1, 1]} : vector<16x96xf32> to vector<16x8xf32>
    %13 = arith.truncf %12 : vector<16x8xf32> to vector<16x8xbf16>
    %14 = vector.extract_strided_slice %7 {offsets = [0, 64], sizes = [16, 8], strides = [1, 1]} : vector<16x96xf32> to vector<16x8xf32>
    %15 = arith.truncf %14 : vector<16x8xf32> to vector<16x8xbf16>
    %cst_7 = arith.constant dense<0.000000e+00> : vector<16x16xf32>
    %16 = tpu.matmul %11, %13, %cst_7 {dimension_numbers = #tpu.dot_dimension_numbers<[1], [1], [0], [0], [0, 0, 1, 0], [], []>} : vector<16x8xbf16>, vector<16x8xbf16>, vector<16x16xf32> -> vector<16x16xf32>
    %cst_8 = arith.constant dense<0xFF800000> : vector<16xf32>
    %17 = vector.multi_reduction <maximumf>, %16, %cst_8 [1] : vector<16x16xf32> to vector<16xf32>
    %18 = vector.shape_cast %17 : vector<16xf32> to vector<16x1xf32>
    %19 = vector.broadcast %18 : vector<16x1xf32> to vector<16x16xf32>
    %20 = arith.subf %16, %19 : vector<16x16xf32>
    %21 = math.exp %20 : vector<16x16xf32>
    %cst_9 = arith.constant dense<0.000000e+00> : vector<16xf32>
    %22 = vector.multi_reduction <add>, %21, %cst_9 [1] : vector<16x16xf32> to vector<16xf32>
    %23 = vector.shape_cast %22 : vector<16xf32> to vector<16x1xf32>
    %24 = arith.truncf %21 : vector<16x16xf32> to vector<16x16xbf16>
    %cst_10 = arith.constant dense<0.000000e+00> : vector<16x8xf32>
    %25 = tpu.matmul %24, %15, %cst_10 {dimension_numbers = #tpu.dot_dimension_numbers<[1], [0], [0], [1], [0, 0, 1, 1], [], []>} : vector<16x16xbf16>, vector<16x8xbf16>, vector<16x8xf32> -> vector<16x8xf32>
    %26 = vector.broadcast %23 : vector<16x1xf32> to vector<16x8xf32>
    %27 = arith.divf %25, %26 : vector<16x8xf32>
    %28 = vector.extract_strided_slice %7 {offsets = [0, 8], sizes = [16, 8], strides = [1, 1]} : vector<16x96xf32> to vector<16x8xf32>
    %cst_11 = arith.constant 0.353553385 : f32
    %29 = vector.broadcast %cst_11 : f32 to vector<16x8xf32>
    %30 = arith.mulf %28, %29 : vector<16x8xf32>
    %31 = arith.truncf %30 : vector<16x8xf32> to vector<16x8xbf16>
    %32 = vector.extract_strided_slice %7 {offsets = [0, 40], sizes = [16, 8], strides = [1, 1]} : vector<16x96xf32> to vector<16x8xf32>
    %33 = arith.truncf %32 : vector<16x8xf32> to vector<16x8xbf16>
    %34 = vector.extract_strided_slice %7 {offsets = [0, 72], sizes = [16, 8], strides = [1, 1]} : vector<16x96xf32> to vector<16x8xf32>
    %35 = arith.truncf %34 : vector<16x8xf32> to vector<16x8xbf16>
    %cst_12 = arith.constant dense<0.000000e+00> : vector<16x16xf32>
    %36 = tpu.matmul %31, %33, %cst_12 {dimension_numbers = #tpu.dot_dimension_numbers<[1], [1], [0], [0], [0, 0, 1, 0], [], []>} : vector<16x8xbf16>, vector<16x8xbf16>, vector<16x16xf32> -> vector<16x16xf32>
    %cst_13 = arith.constant dense<0xFF800000> : vector<16xf32>
    %37 = vector.multi_reduction <maximumf>, %36, %cst_13 [1] : vector<16x16xf32> to vector<16xf32>
    %38 = vector.shape_cast %37 : vector<16xf32> to vector<16x1xf32>
    %39 = vector.broadcast %38 : vector<16x1xf32> to vector<16x16xf32>
    %40 = arith.subf %36, %39 : vector<16x16xf32>
    %41 = math.exp %40 : vector<16x16xf32>
    %cst_14 = arith.constant dense<0.000000e+00> : vector<16xf32>
    %42 = vector.multi_reduction <add>, %41, %cst_14 [1] : vector<16x16xf32> to vector<16xf32>
    %43 = vector.shape_cast %42 : vector<16xf32> to vector<16x1xf32>
    %44 = arith.truncf %41 : vector<16x16xf32> to vector<16x16xbf16>
    %cst_15 = arith.constant dense<0.000000e+00> : vector<16x8xf32>
    %45 = tpu.matmul %44, %35, %cst_15 {dimension_numbers = #tpu.dot_dimension_numbers<[1], [0], [0], [1], [0, 0, 1, 1], [], []>} : vector<16x16xbf16>, vector<16x8xbf16>, vector<16x8xf32> -> vector<16x8xf32>
    %46 = vector.broadcast %43 : vector<16x1xf32> to vector<16x8xf32>
    %47 = arith.divf %45, %46 : vector<16x8xf32>
    %48 = vector.extract_strided_slice %7 {offsets = [0, 16], sizes = [16, 8], strides = [1, 1]} : vector<16x96xf32> to vector<16x8xf32>
    %cst_16 = arith.constant 0.353553385 : f32
    %49 = vector.broadcast %cst_16 : f32 to vector<16x8xf32>
    %50 = arith.mulf %48, %49 : vector<16x8xf32>
    %51 = arith.truncf %50 : vector<16x8xf32> to vector<16x8xbf16>
    %52 = vector.extract_strided_slice %7 {offsets = [0, 48], sizes = [16, 8], strides = [1, 1]} : vector<16x96xf32> to vector<16x8xf32>
    %53 = arith.truncf %52 : vector<16x8xf32> to vector<16x8xbf16>
    %54 = vector.extract_strided_slice %7 {offsets = [0, 80], sizes = [16, 8], strides = [1, 1]} : vector<16x96xf32> to vector<16x8xf32>
    %55 = arith.truncf %54 : vector<16x8xf32> to vector<16x8xbf16>
    %cst_17 = arith.constant dense<0.000000e+00> : vector<16x16xf32>
    %56 = tpu.matmul %51, %53, %cst_17 {dimension_numbers = #tpu.dot_dimension_numbers<[1], [1], [0], [0], [0, 0, 1, 0], [], []>} : vector<16x8xbf16>, vector<16x8xbf16>, vector<16x16xf32> -> vector<16x16xf32>
    %cst_18 = arith.constant dense<0xFF800000> : vector<16xf32>
    %57 = vector.multi_reduction <maximumf>, %56, %cst_18 [1] : vector<16x16xf32> to vector<16xf32>
    %58 = vector.shape_cast %57 : vector<16xf32> to vector<16x1xf32>
    %59 = vector.broadcast %58 : vector<16x1xf32> to vector<16x16xf32>
    %60 = arith.subf %56, %59 : vector<16x16xf32>
    %61 = math.exp %60 : vector<16x16xf32>
    %cst_19 = arith.constant dense<0.000000e+00> : vector<16xf32>
    %62 = vector.multi_reduction <add>, %61, %cst_19 [1] : vector<16x16xf32> to vector<16xf32>
    %63 = vector.shape_cast %62 : vector<16xf32> to vector<16x1xf32>
    %64 = arith.truncf %61 : vector<16x16xf32> to vector<16x16xbf16>
    %cst_20 = arith.constant dense<0.000000e+00> : vector<16x8xf32>
    %65 = tpu.matmul %64, %55, %cst_20 {dimension_numbers = #tpu.dot_dimension_numbers<[1], [0], [0], [1], [0, 0, 1, 1], [], []>} : vector<16x16xbf16>, vector<16x8xbf16>, vector<16x8xf32> -> vector<16x8xf32>
    %66 = vector.broadcast %63 : vector<16x1xf32> to vector<16x8xf32>
    %67 = arith.divf %65, %66 : vector<16x8xf32>
    %68 = vector.extract_strided_slice %7 {offsets = [0, 24], sizes = [16, 8], strides = [1, 1]} : vector<16x96xf32> to vector<16x8xf32>
    %cst_21 = arith.constant 0.353553385 : f32
    %69 = vector.broadcast %cst_21 : f32 to vector<16x8xf32>
    %70 = arith.mulf %68, %69 : vector<16x8xf32>
    %71 = arith.truncf %70 : vector<16x8xf32> to vector<16x8xbf16>
    %72 = vector.extract_strided_slice %7 {offsets = [0, 56], sizes = [16, 8], strides = [1, 1]} : vector<16x96xf32> to vector<16x8xf32>
    %73 = arith.truncf %72 : vector<16x8xf32> to vector<16x8xbf16>
    %74 = vector.extract_strided_slice %7 {offsets = [0, 88], sizes = [16, 8], strides = [1, 1]} : vector<16x96xf32> to vector<16x8xf32>
    %75 = arith.truncf %74 : vector<16x8xf32> to vector<16x8xbf16>
    %cst_22 = arith.constant dense<0.000000e+00> : vector<16x16xf32>
    %76 = tpu.matmul %71, %73, %cst_22 {dimension_numbers = #tpu.dot_dimension_numbers<[1], [1], [0], [0], [0, 0, 1, 0], [], []>} : vector<16x8xbf16>, vector<16x8xbf16>, vector<16x16xf32> -> vector<16x16xf32>
    %cst_23 = arith.constant dense<0xFF800000> : vector<16xf32>
    %77 = vector.multi_reduction <maximumf>, %76, %cst_23 [1] : vector<16x16xf32> to vector<16xf32>
    %78 = vector.shape_cast %77 : vector<16xf32> to vector<16x1xf32>
    %79 = vector.broadcast %78 : vector<16x1xf32> to vector<16x16xf32>
    %80 = arith.subf %76, %79 : vector<16x16xf32>
    %81 = math.exp %80 : vector<16x16xf32>
    %cst_24 = arith.constant dense<0.000000e+00> : vector<16xf32>
    %82 = vector.multi_reduction <add>, %81, %cst_24 [1] : vector<16x16xf32> to vector<16xf32>
    %83 = vector.shape_cast %82 : vector<16xf32> to vector<16x1xf32>
    %84 = arith.truncf %81 : vector<16x16xf32> to vector<16x16xbf16>
    %cst_25 = arith.constant dense<0.000000e+00> : vector<16x8xf32>
    %85 = tpu.matmul %84, %75, %cst_25 {dimension_numbers = #tpu.dot_dimension_numbers<[1], [0], [0], [1], [0, 0, 1, 1], [], []>} : vector<16x16xbf16>, vector<16x8xbf16>, vector<16x8xf32> -> vector<16x8xf32>
    %86 = vector.broadcast %83 : vector<16x1xf32> to vector<16x8xf32>
    %87 = arith.divf %85, %86 : vector<16x8xf32>
    %88 = tpu.concatenate %27, %47, %67, %87 in 1 : vector<16x8xf32>, vector<16x8xf32>, vector<16x8xf32>, vector<16x8xf32> -> vector<16x32xf32>
    %89 = arith.truncf %88 : vector<16x32xf32> to vector<16x32xbf16>
    %c0_26 = arith.constant 0 : index
    %c0_27 = arith.constant 0 : index
    %90 = vector.load %arg4[%c0_26, %c0_27] : memref<32x32xbf16, #tpu.memory_space<vmem>>, vector<32x32xbf16>
    %cst_28 = arith.constant dense<0.000000e+00> : vector<16x32xf32>
    %91 = tpu.matmul %89, %90, %cst_28 {dimension_numbers = #tpu.dot_dimension_numbers<[1], [0], [0], [1], [0, 0, 1, 1], [], []>} : vector<16x32xbf16>, vector<32x32xbf16>, vector<16x32xf32> -> vector<16x32xf32>
    %c0_29 = arith.constant 0 : index
    %c0_30 = arith.constant 0 : index
    %92 = vector.load %arg5[%c0_29, %c0_30] : memref<1x32xf32, #tpu.memory_space<vmem>>, vector<1x32xf32>
    %93 = vector.broadcast %92 : vector<1x32xf32> to vector<16x32xf32>
    %94 = arith.addf %91, %93 : vector<16x32xf32>
    %95 = arith.addf %1, %94 : vector<16x32xf32>
    %c0_31 = arith.constant 0 : index
    %c0_32 = arith.constant 0 : index
    %96 = vector.load %arg6[%c0_31, %c0_32] : memref<1x32xf32, #tpu.memory_space<vmem>>, vector<1x32xf32>
    %c0_33 = arith.constant 0 : index
    %c0_34 = arith.constant 0 : index
    %97 = vector.load %arg7[%c0_33, %c0_34] : memref<1x32xf32, #tpu.memory_space<vmem>>, vector<1x32xf32>
    %cst_35 = arith.constant dense<0.000000e+00> : vector<16xf32>
    %98 = vector.multi_reduction <add>, %95, %cst_35 [1] : vector<16x32xf32> to vector<16xf32>
    %99 = vector.shape_cast %98 : vector<16xf32> to vector<16x1xf32>
    %cst_36 = arith.constant 3.200000e+01 : f32
    %100 = vector.broadcast %cst_36 : f32 to vector<16x1xf32>
    %101 = arith.divf %99, %100 : vector<16x1xf32>
    %102 = vector.broadcast %101 : vector<16x1xf32> to vector<16x32xf32>
    %103 = arith.subf %95, %102 : vector<16x32xf32>
    %104 = arith.mulf %103, %103 : vector<16x32xf32>
    %cst_37 = arith.constant dense<0.000000e+00> : vector<16xf32>
    %105 = vector.multi_reduction <add>, %104, %cst_37 [1] : vector<16x32xf32> to vector<16xf32>
    %106 = vector.shape_cast %105 : vector<16xf32> to vector<16x1xf32>
    %cst_38 = arith.constant 3.200000e+01 : f32
    %107 = vector.broadcast %cst_38 : f32 to vector<16x1xf32>
    %108 = arith.divf %106, %107 : vector<16x1xf32>
    %109 = vector.broadcast %101 : vector<16x1xf32> to vector<16x32xf32>
    %110 = arith.subf %95, %109 : vector<16x32xf32>
    %cst_39 = arith.constant 9.99999974E-6 : f32
    %111 = vector.broadcast %cst_39 : f32 to vector<16x1xf32>
    %112 = arith.addf %108, %111 : vector<16x1xf32>
    %113 = math.rsqrt %112 : vector<16x1xf32>
    %114 = vector.broadcast %113 : vector<16x1xf32> to vector<16x32xf32>
    %115 = arith.mulf %110, %114 : vector<16x32xf32>
    %116 = vector.broadcast %96 : vector<1x32xf32> to vector<16x32xf32>
    %117 = arith.mulf %115, %116 : vector<16x32xf32>
    %118 = vector.broadcast %97 : vector<1x32xf32> to vector<16x32xf32>
    %119 = arith.addf %117, %118 : vector<16x32xf32>
    %c0_40 = arith.constant 0 : index
    %c0_41 = arith.constant 0 : index
    %c0_42 = arith.constant 0 : index
    %120 = vector.load %arg8[%c0_40, %c0_41, %c0_42] : memref<1x16x32xf32, #tpu.memory_space<vmem>>, vector<1x16x32xf32>
    %121 = vector.shape_cast %120 : vector<1x16x32xf32> to vector<16x32xf32>
    %122 = vector.shape_cast %119 : vector<16x32xf32> to vector<1x16x32xf32>
    tpu.vector_store %arg8[%c0_40, %c0_41, %c0_42], %122 {strides = array<i32>} : memref<1x16x32xf32, #tpu.memory_space<vmem>>, vector<1x16x32xf32>,
    return
  }
  func.func @transform_0(%arg0: i32) -> (i32, i32, i32) {
    %c0_i32 = arith.constant 0 : i32
    %c0_i32_0 = arith.constant 0 : i32
    %c0_i32_1 = arith.constant 0 : i32
    return %arg0, %c0_i32, %c0_i32_0 : i32, i32, i32
  }
  func.func @transform_1(%arg0: i32) -> (i32, i32) {
    %c0_i32 = arith.constant 0 : i32
    %c0_i32_0 = arith.constant 0 : i32
    %c0_i32_1 = arith.constant 0 : i32
    return %c0_i32, %c0_i32_0 : i32, i32
  }
  func.func @transform_2(%arg0: i32) -> (i32, i32) {
    %c0_i32 = arith.constant 0 : i32
    %c0_i32_0 = arith.constant 0 : i32
    %c0_i32_1 = arith.constant 0 : i32
    return %c0_i32, %c0_i32_0 : i32, i32
  }
  func.func @transform_3(%arg0: i32) -> (i32, i32) {
    %c0_i32 = arith.constant 0 : i32
    %c0_i32_0 = arith.constant 0 : i32
    %c0_i32_1 = arith.constant 0 : i32
    return %c0_i32, %c0_i32_0 : i32, i32
  }
  func.func @transform_4(%arg0: i32) -> (i32, i32) {
    %c0_i32 = arith.constant 0 : i32
    %c0_i32_0 = arith.constant 0 : i32
    %c0_i32_1 = arith.constant 0 : i32
    return %c0_i32, %c0_i32_0 : i32, i32
  }
  func.func @transform_5(%arg0: i32) -> (i32, i32) {
    %c0_i32 = arith.constant 0 : i32
    %c0_i32_0 = arith.constant 0 : i32
    %c0_i32_1 = arith.constant 0 : i32
    return %c0_i32, %c0_i32_0 : i32, i32
  }
  func.func @transform_6(%arg0: i32) -> (i32, i32) {
    %c0_i32 = arith.constant 0 : i32
    %c0_i32_0 = arith.constant 0 : i32
    %c0_i32_1 = arith.constant 0 : i32
    return %c0_i32, %c0_i32_0 : i32, i32
  }
  func.func @transform_7(%arg0: i32) -> (i32, i32, i32) {
    %c0_i32 = arith.constant 0 : i32
    %c0_i32_0 = arith.constant 0 : i32
    %c0_i32_1 = arith.constant 0 : i32
    return %arg0, %c0_i32, %c0_i32_0 : i32, i32, i32
  }
}

module attributes {stable_mosaic.version = 11 : i64} {
  func.func @_ffn_block_kernel(%arg0: i32, %arg1: memref<16x32xf32, #tpu.memory_space<vmem>>, %arg2: memref<32x64xbf16, #tpu.memory_space<vmem>>, %arg3: memref<1x64xf32, #tpu.memory_space<vmem>>, %arg4: memref<64x32xbf16, #tpu.memory_space<vmem>>, %arg5: memref<1x32xf32, #tpu.memory_space<vmem>>, %arg6: memref<1x32xf32, #tpu.memory_space<vmem>>, %arg7: memref<1x32xf32, #tpu.memory_space<vmem>>, %arg8: memref<16x32xf32, #tpu.memory_space<vmem>>) attributes {dimension_semantics = [#tpu.dimension_semantics<parallel>], iteration_bounds = array<i64: 2>, scalar_prefetch = 0 : i64, scratch_operands = 0 : i64, tpu.core_type = #tpu.core_type<tc>, window_params = [{transform_indices = @transform_0, window_bounds = array<i64: 16, 32>}, {pipeline_mode = #tpu.pipeline_mode<synchronous>, transform_indices = @transform_1, window_bounds = array<i64: 32, 64>}, {pipeline_mode = #tpu.pipeline_mode<synchronous>, transform_indices = @transform_2, window_bounds = array<i64: 1, 64>}, {pipeline_mode = #tpu.pipeline_mode<synchronous>, transform_indices = @transform_3, window_bounds = array<i64: 64, 32>}, {pipeline_mode = #tpu.pipeline_mode<synchronous>, transform_indices = @transform_4, window_bounds = array<i64: 1, 32>}, {pipeline_mode = #tpu.pipeline_mode<synchronous>, transform_indices = @transform_5, window_bounds = array<i64: 1, 32>}, {pipeline_mode = #tpu.pipeline_mode<synchronous>, transform_indices = @transform_6, window_bounds = array<i64: 1, 32>}, {transform_indices = @transform_7, window_bounds = array<i64: 16, 32>}]} {
    %c0 = arith.constant 0 : index
    %c0_0 = arith.constant 0 : index
    %0 = vector.load %arg1[%c0, %c0_0] : memref<16x32xf32, #tpu.memory_space<vmem>>, vector<16x32xf32>
    %1 = arith.truncf %0 : vector<16x32xf32> to vector<16x32xbf16>
    %c0_1 = arith.constant 0 : index
    %c0_2 = arith.constant 0 : index
    %2 = vector.load %arg2[%c0_1, %c0_2] : memref<32x64xbf16, #tpu.memory_space<vmem>>, vector<32x64xbf16>
    %cst = arith.constant dense<0.000000e+00> : vector<16x64xf32>
    %3 = tpu.matmul %1, %2, %cst {dimension_numbers = #tpu.dot_dimension_numbers<[1], [0], [0], [1], [0, 0, 1, 1], [], []>} : vector<16x32xbf16>, vector<32x64xbf16>, vector<16x64xf32> -> vector<16x64xf32>
    %c0_3 = arith.constant 0 : index
    %c0_4 = arith.constant 0 : index
    %4 = vector.load %arg3[%c0_3, %c0_4] : memref<1x64xf32, #tpu.memory_space<vmem>>, vector<1x64xf32>
    %5 = vector.broadcast %4 : vector<1x64xf32> to vector<16x64xf32>
    %6 = arith.addf %3, %5 : vector<16x64xf32>
    %cst_5 = arith.constant 0.000000e+00 : f32
    %7 = vector.broadcast %cst_5 : f32 to vector<16x64xf32>
    %8 = arith.maximumf %6, %7 : vector<16x64xf32>
    %9 = arith.truncf %8 : vector<16x64xf32> to vector<16x64xbf16>
    %c0_6 = arith.constant 0 : index
    %c0_7 = arith.constant 0 : index
    %10 = vector.load %arg4[%c0_6, %c0_7] : memref<64x32xbf16, #tpu.memory_space<vmem>>, vector<64x32xbf16>
    %cst_8 = arith.constant dense<0.000000e+00> : vector<16x32xf32>
    %11 = tpu.matmul %9, %10, %cst_8 {dimension_numbers = #tpu.dot_dimension_numbers<[1], [0], [0], [1], [0, 0, 1, 1], [], []>} : vector<16x64xbf16>, vector<64x32xbf16>, vector<16x32xf32> -> vector<16x32xf32>
    %12 = arith.addf %0, %11 : vector<16x32xf32>
    %c0_9 = arith.constant 0 : index
    %c0_10 = arith.constant 0 : index
    %13 = vector.load %arg5[%c0_9, %c0_10] : memref<1x32xf32, #tpu.memory_space<vmem>>, vector<1x32xf32>
    %14 = vector.broadcast %13 : vector<1x32xf32> to vector<16x32xf32>
    %15 = arith.addf %12, %14 : vector<16x32xf32>
    %c0_11 = arith.constant 0 : index
    %c0_12 = arith.constant 0 : index
    %16 = vector.load %arg6[%c0_11, %c0_12] : memref<1x32xf32, #tpu.memory_space<vmem>>, vector<1x32xf32>
    %c0_13 = arith.constant 0 : index
    %c0_14 = arith.constant 0 : index
    %17 = vector.load %arg7[%c0_13, %c0_14] : memref<1x32xf32, #tpu.memory_space<vmem>>, vector<1x32xf32>
    %cst_15 = arith.constant dense<0.000000e+00> : vector<16xf32>
    %18 = vector.multi_reduction <add>, %15, %cst_15 [1] : vector<16x32xf32> to vector<16xf32>
    %19 = vector.shape_cast %18 : vector<16xf32> to vector<16x1xf32>
    %cst_16 = arith.constant 3.200000e+01 : f32
    %20 = vector.broadcast %cst_16 : f32 to vector<16x1xf32>
    %21 = arith.divf %19, %20 : vector<16x1xf32>
    %22 = vector.broadcast %21 : vector<16x1xf32> to vector<16x32xf32>
    %23 = arith.subf %15, %22 : vector<16x32xf32>
    %24 = arith.mulf %23, %23 : vector<16x32xf32>
    %cst_17 = arith.constant dense<0.000000e+00> : vector<16xf32>
    %25 = vector.multi_reduction <add>, %24, %cst_17 [1] : vector<16x32xf32> to vector<16xf32>
    %26 = vector.shape_cast %25 : vector<16xf32> to vector<16x1xf32>
    %cst_18 = arith.constant 3.200000e+01 : f32
    %27 = vector.broadcast %cst_18 : f32 to vector<16x1xf32>
    %28 = arith.divf %26, %27 : vector<16x1xf32>
    %29 = vector.broadcast %21 : vector<16x1xf32> to vector<16x32xf32>
    %30 = arith.subf %15, %29 : vector<16x32xf32>
    %cst_19 = arith.constant 9.99999974E-6 : f32
    %31 = vector.broadcast %cst_19 : f32 to vector<16x1xf32>
    %32 = arith.addf %28, %31 : vector<16x1xf32>
    %33 = math.rsqrt %32 : vector<16x1xf32>
    %34 = vector.broadcast %33 : vector<16x1xf32> to vector<16x32xf32>
    %35 = arith.mulf %30, %34 : vector<16x32xf32>
    %36 = vector.broadcast %16 : vector<1x32xf32> to vector<16x32xf32>
    %37 = arith.mulf %35, %36 : vector<16x32xf32>
    %38 = vector.broadcast %17 : vector<1x32xf32> to vector<16x32xf32>
    %39 = arith.addf %37, %38 : vector<16x32xf32>
    %c0_20 = arith.constant 0 : index
    %c0_21 = arith.constant 0 : index
    %40 = vector.load %arg8[%c0_20, %c0_21] : memref<16x32xf32, #tpu.memory_space<vmem>>, vector<16x32xf32>
    tpu.vector_store %arg8[%c0_20, %c0_21], %39 {strides = array<i32>} : memref<16x32xf32, #tpu.memory_space<vmem>>, vector<16x32xf32>,
    return
  }
  func.func @transform_0(%arg0: i32) -> (i32, i32) {
    %c0_i32 = arith.constant 0 : i32
    %c0_i32_0 = arith.constant 0 : i32
    return %arg0, %c0_i32 : i32, i32
  }
  func.func @transform_1(%arg0: i32) -> (i32, i32) {
    %c0_i32 = arith.constant 0 : i32
    %c0_i32_0 = arith.constant 0 : i32
    %c0_i32_1 = arith.constant 0 : i32
    return %c0_i32, %c0_i32_0 : i32, i32
  }
  func.func @transform_2(%arg0: i32) -> (i32, i32) {
    %c0_i32 = arith.constant 0 : i32
    %c0_i32_0 = arith.constant 0 : i32
    %c0_i32_1 = arith.constant 0 : i32
    return %c0_i32, %c0_i32_0 : i32, i32
  }
  func.func @transform_3(%arg0: i32) -> (i32, i32) {
    %c0_i32 = arith.constant 0 : i32
    %c0_i32_0 = arith.constant 0 : i32
    %c0_i32_1 = arith.constant 0 : i32
    return %c0_i32, %c0_i32_0 : i32, i32
  }
  func.func @transform_4(%arg0: i32) -> (i32, i32) {
    %c0_i32 = arith.constant 0 : i32
    %c0_i32_0 = arith.constant 0 : i32
    %c0_i32_1 = arith.constant 0 : i32
    return %c0_i32, %c0_i32_0 : i32, i32
  }
  func.func @transform_5(%arg0: i32) -> (i32, i32) {
    %c0_i32 = arith.constant 0 : i32
    %c0_i32_0 = arith.constant 0 : i32
    %c0_i32_1 = arith.constant 0 : i32
    return %c0_i32, %c0_i32_0 : i32, i32
  }
  func.func @transform_6(%arg0: i32) -> (i32, i32) {
    %c0_i32 = arith.constant 0 : i32
    %c0_i32_0 = arith.constant 0 : i32
    %c0_i32_1 = arith.constant 0 : i32
    return %c0_i32, %c0_i32_0 : i32, i32
  }
  func.func @transform_7(%arg0: i32) -> (i32, i32) {
    %c0_i32 = arith.constant 0 : i32
    %c0_i32_0 = arith.constant 0 : i32
    return %arg0, %c0_i32 : i32, i32
  }
}

module attributes {stable_mosaic.version = 11 : i64} {
  func.func @_linear_kernel(%arg0: i32, %arg1: memref<16x32xf32, #tpu.memory_space<vmem>>, %arg2: memref<32x128xbf16, #tpu.memory_space<vmem>>, %arg3: memref<1x128xf32, #tpu.memory_space<vmem>>, %arg4: memref<16x128xf32, #tpu.memory_space<vmem>>) attributes {dimension_semantics = [#tpu.dimension_semantics<parallel>], iteration_bounds = array<i64: 2>, scalar_prefetch = 0 : i64, scratch_operands = 0 : i64, tpu.core_type = #tpu.core_type<tc>, window_params = [{transform_indices = @transform_0, window_bounds = array<i64: 16, 32>}, {pipeline_mode = #tpu.pipeline_mode<synchronous>, transform_indices = @transform_1, window_bounds = array<i64: 32, 128>}, {pipeline_mode = #tpu.pipeline_mode<synchronous>, transform_indices = @transform_2, window_bounds = array<i64: 1, 128>}, {transform_indices = @transform_3, window_bounds = array<i64: 16, 128>}]} {
    %c0 = arith.constant 0 : index
    %c0_0 = arith.constant 0 : index
    %0 = vector.load %arg1[%c0, %c0_0] : memref<16x32xf32, #tpu.memory_space<vmem>>, vector<16x32xf32>
    %1 = arith.truncf %0 : vector<16x32xf32> to vector<16x32xbf16>
    %c0_1 = arith.constant 0 : index
    %c0_2 = arith.constant 0 : index
    %2 = vector.load %arg2[%c0_1, %c0_2] : memref<32x128xbf16, #tpu.memory_space<vmem>>, vector<32x128xbf16>
    %cst = arith.constant dense<0.000000e+00> : vector<16x128xf32>
    %3 = tpu.matmul %1, %2, %cst {dimension_numbers = #tpu.dot_dimension_numbers<[1], [0], [0], [1], [0, 0, 1, 1], [], []>} : vector<16x32xbf16>, vector<32x128xbf16>, vector<16x128xf32> -> vector<16x128xf32>
    %c0_3 = arith.constant 0 : index
    %c0_4 = arith.constant 0 : index
    %4 = vector.load %arg3[%c0_3, %c0_4] : memref<1x128xf32, #tpu.memory_space<vmem>>, vector<1x128xf32>
    %5 = vector.broadcast %4 : vector<1x128xf32> to vector<16x128xf32>
    %6 = arith.addf %3, %5 : vector<16x128xf32>
    %c0_5 = arith.constant 0 : index
    %c0_6 = arith.constant 0 : index
    %7 = vector.load %arg4[%c0_5, %c0_6] : memref<16x128xf32, #tpu.memory_space<vmem>>, vector<16x128xf32>
    tpu.vector_store %arg4[%c0_5, %c0_6], %6 {strides = array<i32>} : memref<16x128xf32, #tpu.memory_space<vmem>>, vector<16x128xf32>,
    return
  }
  func.func @transform_0(%arg0: i32) -> (i32, i32) {
    %c0_i32 = arith.constant 0 : i32
    %c0_i32_0 = arith.constant 0 : i32
    return %arg0, %c0_i32 : i32, i32
  }
  func.func @transform_1(%arg0: i32) -> (i32, i32) {
    %c0_i32 = arith.constant 0 : i32
    %c0_i32_0 = arith.constant 0 : i32
    %c0_i32_1 = arith.constant 0 : i32
    return %c0_i32, %c0_i32_0 : i32, i32
  }
  func.func @transform_2(%arg0: i32) -> (i32, i32) {
    %c0_i32 = arith.constant 0 : i32
    %c0_i32_0 = arith.constant 0 : i32
    %c0_i32_1 = arith.constant 0 : i32
    return %c0_i32, %c0_i32_0 : i32, i32
  }
  func.func @transform_3(%arg0: i32) -> (i32, i32) {
    %c0_i32 = arith.constant 0 : i32
    %c0_i32_0 = arith.constant 0 : i32
    return %arg0, %c0_i32 : i32, i32
  }
}

</mosaic_0001>

<bundles_post_ra>
// kernel: transformer_autoencoder_forward.6
= control target key start
LH: loop header
LB: loop body
LE: loop exit
PB: predicated region body
PF: predicated region fallthrough
CT: control target
= control target key end

     0   :  { %s355_s12 = smov 0   ;;  %s378_s0 = inlined_call_operand.vmem [shape: f32[32,8], index: 0, kind: input, shape index: {}]   ;;  %s379_s1 = inlined_call_operand.vmem [shape: bf16[8,32], index: 1, kind: input, shape index: {}]   ;;  %s380_s2 = inlined_call_operand.vmem [shape: f32[1,32], index: 2, kind: input, shape index: {}]   ;;  %s381_s3 = inlined_call_operand.vmem [shape: f32[32,32], index: 3, kind: output, shape index: {}]  }
   0x1 LB: > { %s294_s13 = sadd.s32 4294967295, %s331_s12   ;;  %p298_p0 = scmp.ge.s32.totalorder %s331_s12, 1  ;;  %s331_s12 = sphi %s355_s12, %s13_s12  }
   0x2   : > { %p138_p1 = scmp.lt.s32.totalorder %s331_s12, 3 }
   0x4   : > { %p139_p2 = pnand %p298_p0, %p138_p1 }
   0x5   : > { %s299_s16 = sshll.u32 (!%p139_p2), %s294_s13, 1 }
   0x6   : > { %142 = sbr.rel (%p139_p2) target bundleno = 217 (0xd9), region = 32  ;;  %p163_p3 = scmp.lt.s32.totalorder (!%p139_p2), %s299_s16, 3 }
   0xb   : > { %v178_v0 = vld [vmem:[%s379_s1] sm:$0xf]  ;;  %vm190_vm0 = vcmask 1043456   ;;  %v333_v1 = vmov 0.0   ;;  %vm334_vm1 = vmmov 0   ;;  %s383_s16 = smov (!%p163_p3, %s299_s16), 3 }
   0xc   : > { %309 = vmatprep.subr.bf16.mxu0 %v333_v1  ;;  %v192_v2 = vsel %vm190_vm0, %v178_v0, 0  ;;  %311 = vmatprep.mubr.msk.bf16.mxu0 %vm334_vm1, %v333_v1  ;;  %s300_s17 = sshll.u32 %s383_s16, 3  ;;  %vm186_vm2 = vcmask 64512   ;;  %v303_v6 = vld [vmem:[%s380_s2] ss:$0 sm:$0xff]  ;;  %vm235_vm3 = vcmask 261120  }
   0xd   : > { %310 = vmatpush3.bf16.msra.mxu0 %v192_v2  ;;  %s166_s20 = scalar_lea.vmem %s378_s0, %s300_s17  ;;  %s172_s25 = scalar_lea.vmem %s381_s3, %s300_s17 }
   0xe   : > { %v175_v3 = vld [vmem:[%s166_s20] sm:$0xff]  ;;  %v176_v4 = vld [vmem:[%s166_s20 + $0x8] sm:$0xff] }
   0xf   : > { %v177_v5 = vpack.c.bf16 %v176_v4, %v175_v3 }
  0x11   : > { %312 = vmatmul.mubr.msk.bf16.vlgmr.msra.gmra.mxu0 %vm186_vm2, %v177_v5 }
  0xd1   : > { %v228_v7 = vpop.f32.mrf.mxu0 }
  0xd2   : > { %v229_v8 = vadd.f32 %v303_v6, %v228_v7 }
  0xd3   : > { %v313_v9 = vpop.f32.mrf.mxu0 }
  0xd4   : > { %236 = vst.msk [vmem:[%s172_s25] sm:$0xff] %vm235_vm3, %v229_v8 }
  0xd5   : > { %v231_v10 = vpop.f32.mrf.mxu0 }
  0xd6   : > { %v232_v11 = vadd.f32 %v303_v6, %v231_v10 }
  0xd7   : > { %v314_v12 = vpop.f32.mrf.mxu0 }
  0xd8   : > { %237 = vst.msk [vmem:[%s172_s25 + $0x8] sm:$0xff] %vm235_vm3, %v232_v11 }
  0xd9 PF: > { %s13_s12 = sadd.s32 1, %s331_s12  }
  0xda   : > { %p10_p4 = scmp.ge.s32.totalorder %s13_s12, 4  }
  0xdc   :  { %12 = sbr.rel (!%p10_p4) target bundleno = 1 (0x1), region = 62 }

// kernel: transformer_autoencoder_forward.7
= control target key start
LH: loop header
LB: loop body
LE: loop exit
PB: predicated region body
PF: predicated region fallthrough
CT: control target
= control target key end

     0   :  { %s1304_s24 = smov 0   ;;  %s1454_s0 = inlined_call_operand.vmem [shape: f32[2,16,32], index: 0, kind: input, shape index: {}]   ;;  %s1455_s1 = inlined_call_operand.vmem [shape: bf16[32,96], index: 1, kind: input, shape index: {}]   ;;  %s1456_s2 = inlined_call_operand.vmem [shape: f32[1,96], index: 2, kind: input, shape index: {}]   ;;  %s1457_s3 = inlined_call_operand.vmem [shape: bf16[32,32], index: 3, kind: input, shape index: {}]   ;;  %s1458_s4 = inlined_call_operand.vmem [shape: f32[1,32], index: 4, kind: input, shape index: {}]   ;;  %s1459_s5 = inlined_call_operand.vmem [shape: f32[1,32], index: 5, kind: input, shape index: {}]   ;;  %s1460_s6 = inlined_call_operand.vmem [shape: f32[1,32], index: 6, kind: input, shape index: {}]   ;;  %s1461_s7 = inlined_call_operand.vmem [shape: f32[2,16,32], index: 7, kind: output, shape index: {}]  }
   0x1 LB: > { %s1044_s25 = sadd.s32 4294967295, %s1246_s24   ;;  %p1048_p0 = scmp.ge.s32.totalorder %s1246_s24, 1  ;;  %s1246_s24 = sphi %s1304_s24, %s17_s24  }
   0x2   : > { %p237_p1 = scmp.lt.s32.totalorder %s1246_s24, 3 }
   0x4   : > { %p238_p2 = pnand %p1048_p0, %p237_p1 }
   0x5   : > { %p269_p3 = scmp.lt.s32.totalorder (!%p238_p2), %s1044_s25, 1  ;;  %s1250_s13 = smov (!%p238_p2), 96  }
   0x6   : > { %241 = sbr.rel (%p238_p2) target bundleno = 1600 (0x640), region = 48  ;;  %s1251_s14 = smov (!%p238_p2), 120  }
   0x7   : > { %s1252_s15 = smov (!%p238_p2), 88   ;;  %s1253_s16 = smov (!%p238_p2), 80  }
   0x8   : > { %s1254_s17 = smov (!%p238_p2), 112   ;;  %s1255_s18 = smov (!%p238_p2), 72  }
   0x9   : > { %s1256_s19 = smov (!%p238_p2), 104   ;;  %s1257_s20 = smov (!%p238_p2), 56  }
   0xa   : > { %s1258_s21 = smov (!%p238_p2), 64   ;;  %s1259_s22 = smov (!%p238_p2), 48  }
   0xb   : > { %v1200_v0 = vld [vmem:[%s1455_s1 + $0x8] sm:$0xff]   ;;  %v1248_v1 = vmov 0.0   ;;  %v1201_v2 = vld [vmem:[%s1455_s1] sm:$0xff]   ;;  %vm1249_vm0 = vmmov 0   ;;  %s1463_s25 = smov (!%p269_p3, %s1044_s25), 1  ;;  %vm306_vm1 = vcmask 261120  }
   0xc   : > { %1097 = vmatprep.subr.bf16.mxu0 %v1248_v1  ;;  %1105 = vmatprep.subr.bf16.mxu1 %v1248_v1  ;;  %s1073_s30 = sshll.u32 %s1463_s25, 4  ;;  %v1053_v6 = vld [vmem:[%s1456_s2] ss:$0 sm:$0xff]  ;;  %vm358_vm2 = vcmask 64512   ;;  %vm406_vm3 = vcmask 130048   ;;  %s1260_s23 = smov 40  }
   0xd   : > { %1098 = vmatpush3.bf16.msra.mxu0 %v1200_v0  ;;  %1101 = vmatprep.mubr.msk.bf16.mxu0 %vm1249_vm0, %v1248_v1  ;;  %s273_s10 = scalar_lea.vmem %s1454_s0, %s1073_s30  ;;  %s1261_s26 = smov 8   ;;  %vm869_vm4 = vcmask 195584  }
   0xe   : > { %1099 = vmatprep.subr.bf16.mxu0 %v1248_v1  ;;  %1107 = vmatprep.mubr.msk.bf16.mxu1 %vm1249_vm0, %v1248_v1  ;;  %v1334_v3 = vld [vmem:[%s273_s10] sm:$0xff]  ;;  %v1336_v4 = vld [vmem:[%s273_s10 + $0x8] sm:$0xff]  ;;  %s1262_s9 = smov 16   ;;  %s1263_s10 = smov 24  }
   0xf   : > { %v282_v5 = vpack.c.bf16 %v1336_v4, %v1334_v3 }
  0x11   : > { %1100 = vmatpush3.bf16.msra.mxu0 %v1201_v2 }
  0x12   : > { %1111 = vmatprep.subr.bf16.mxu0 %v1248_v1 }
  0x14   : > { %1102 = vmatmul.mubr.msk.bf16.vlgmr.msra.gmra.mxu0 %vm306_vm1, %v282_v5 }
  0x15   : > { %1113 = vmatprep.mubr.msk.bf16.mxu0 %vm1249_vm0, %v1248_v1 }
  0xd4   : > { %v344_v7 = vpop.f32.mrf.mxu0 }
  0xd5   : > { %v345_v9 = vadd.f32 %v1053_v6, %v344_v7 }
  0xd6   : > { %v1103_v8 = vpop.f32.mrf.mxu0 }
  0xd7   : > { %v351_v13 = vmul.f32 0.35355338, %v345_v9 }
  0xd8   : > { %v347_v10 = vpop.f32.mrf.mxu0 }
  0xd9   : > { %v348_v11 = vadd.f32 %v1053_v6, %v347_v10 }
  0xda   : > { %v1104_v12 = vpop.f32.mrf.mxu0 }
  0xdb   : > { %v352_v14 = vmul.f32 0.35355338, %v348_v11  ;;  %v1346_v15 = vpack.c.bf16 %v348_v11, %v345_v9 }
  0xdd   : > { %v353_v16 = vpack.c.bf16 %v352_v14, %v351_v13  ;;  %356 = vrot.lane.b32.xlu0 %v1346_v15, %s1250_s13 }
  0xdf   : > { %478 = vrot.lane.b32.xlu1 %v353_v16, %s1251_s14 }
  0xe1   : > { %480 = vrot.lane.b32.xlu0 %v1346_v15, %s1252_s15 }
  0xe3   : > { %601 = vrot.lane.b32.xlu1 %v1346_v15, %s1253_s16 }
  0xe5   : > { %599 = vrot.lane.b32.xlu0 %v353_v16, %s1254_s17 }
  0xe7   : > { %722 = vrot.lane.b32.xlu1 %v1346_v15, %s1255_s18 }
  0xe9   : > { %720 = vrot.lane.b32.xlu0 %v353_v16, %s1256_s19  ;;  %s278_s19 = scalar_lea.vmem %s1461_s7, %s1073_s30 }
 0x14f   : > { %v357_v17 = vpop.permute.xlu0 %356 }
 0x150   : > { %v363_v18 = vsel %vm358_vm2, %v357_v17, 0 }
 0x151   : > { %1106 = vmatpush3.bf16.xpose.msra.mxu1 %v363_v18  ;;  %v479_v20 = vpop.permute.xlu1 %478 }
 0x152   : > { %1117 = vmatprep.subr.bf16.mxu1 %v1248_v1 }
 0x153   : > { %v481_v19 = vpop.permute.xlu0 %480 }
 0x154   : > { %v486_v21 = vsel %vm358_vm2, %v481_v19, 0 }
 0x155   : > { %v602_v22 = vpop.permute.xlu1 %601 }
 0x156   : > { %v607_v23 = vsel %vm358_vm2, %v602_v22, 0 }
 0x157   : > { %v600_v25 = vpop.permute.xlu0 %599 }
 0x158   : > { %1108 = vmatmul.mubr.msk.bf16.vlgmr.msra.gmra.mxu1 %vm358_vm2, %v353_v16 }
 0x159   : > { %1118 = vmatpush3.bf16.xpose.msra.mxu1 %v486_v21  ;;  %1119 = vmatprep.mubr.msk.bf16.mxu1 %vm1249_vm0, %v1248_v1  ;;  %v723_v24 = vpop.permute.xlu1 %722 }
 0x15a   : > { %1129 = vmatprep.subr.bf16.mxu1 %v1248_v1  ;;  %v728_v26 = vsel %vm358_vm2, %v723_v24, 0 }
 0x15b   : > { %v721_v27 = vpop.permute.xlu0 %720 }
 0x160   : > { %1120 = vmatmul.mubr.msk.bf16.vlgmr.msra.gmra.mxu1 %vm358_vm2, %v479_v20 }
 0x161   : > { %1130 = vmatpush3.bf16.xpose.msra.mxu1 %v607_v23  ;;  %1131 = vmatprep.mubr.msk.bf16.mxu1 %vm1249_vm0, %v1248_v1 }
 0x162   : > { %1141 = vmatprep.subr.bf16.mxu1 %v1248_v1 }
 0x168   : > { %1132 = vmatmul.mubr.msk.bf16.vlgmr.msra.gmra.mxu1 %vm358_vm2, %v600_v25 }
 0x169   : > { %1142 = vmatpush3.bf16.xpose.msra.mxu1 %v728_v26  ;;  %1143 = vmatprep.mubr.msk.bf16.mxu1 %vm1249_vm0, %v1248_v1 }
 0x16a   : > { %1153 = vmatprep.subr.bf16.mxu1 %v1248_v1 }
 0x170   : > { %1144 = vmatmul.mubr.msk.bf16.vlgmr.msra.gmra.mxu1 %vm358_vm2, %v721_v27 }
 0x171   : > { %1157 = vmatprep.mubr.msk.bf16.mxu1 %vm1249_vm0, %v1248_v1 }
 0x218   : > { %v399_v28 = vpop.f32.mrf.mxu1 }
 0x219   : > { %v407_v29 = vsel %vm406_vm3, %v399_v28, -inf }
 0x21a   : > { %408 = vmax.xlane.f32.xlu1 %v407_v29  ;;  %v1109_v30 = vpop.f32.mrf.mxu1 }
 0x21c   : > { %v402_v31 = vpop.f32.mrf.mxu1 }
 0x21d   : > { %v410_v32 = vsel %vm406_vm3, %v402_v31, -inf }
 0x21e   : > { %411 = vmax.xlane.f32.xlu0 %v410_v32  ;;  %v1110_v33 = vpop.f32.mrf.mxu1 }
 0x220   : > { %v522_v34 = vpop.f32.mrf.mxu1 }
 0x221   : > { %v529_v35 = vsel %vm406_vm3, %v522_v34, -inf }
 0x222   : > { %530 = vmax.xlane.f32.xlu0 %v529_v35  ;;  %v1121_v36 = vpop.f32.mrf.mxu1 }
 0x224   : > { %v525_v37 = vpop.f32.mrf.mxu1 }
 0x225   : > { %v532_v38 = vsel %vm406_vm3, %v525_v37, -inf }
 0x226   : > { %533 = vmax.xlane.f32.xlu1 %v532_v38  ;;  %v1122_v39 = vpop.f32.mrf.mxu1 }
 0x228   : > { %v643_v40 = vpop.f32.mrf.mxu1 }
 0x229   : > { %v650_v41 = vsel %vm406_vm3, %v643_v40, -inf }
 0x22a   : > { %651 = vmax.xlane.f32.xlu0 %v650_v41  ;;  %v1133_v42 = vpop.f32.mrf.mxu1 }
 0x22c   : > { %v1377_v43 = vpop.f32.mrf.mxu1 }
 0x22d   : > { %v653_v49 = vsel %vm406_vm3, %v1377_v43, -inf }
 0x22e   : > { %v1134_v44 = vpop.f32.mrf.mxu1 }
 0x230   : > { %v1379_v45 = vpop.f32.mrf.mxu1 }
 0x231   : > { %v771_v50 = vsel %vm406_vm3, %v1379_v45, -inf }
 0x232   : > { %v1145_v46 = vpop.f32.mrf.mxu1 }
 0x234   : > { %v1381_v47 = vpop.f32.mrf.mxu1 }
 0x235   : > { %v774_v51 = vsel %vm406_vm3, %v1381_v47, -inf }
 0x236   : > { %v1146_v48 = vpop.f32.mrf.mxu1 }
 0x237   : > { %548 = vrot.lane.b32.xlu1 %v1346_v15, %s1257_s20 }
 0x240   : > { %426 = vrot.lane.b32.xlu0 %v1346_v15, %s1258_s21 }
 0x25b   : > { %654 = vmax.xlane.f32.xlu1 %v653_v49 }
 0x25f   : > { %772 = vmax.xlane.f32.xlu0 %v771_v50  ;;  %775 = vmax.xlane.f32.xlu1 %v774_v51 }
 0x270   : > { %669 = vrot.lane.b32.xlu1 %v1346_v15, %s1259_s22 }
 0x275   : > { %790 = vrot.lane.b32.xlu0 %v1346_v15, %s1260_s23 }
 0x2a3   : > { %v409_v52 = vpop.xlane.xlu1 %408 }
 0x2a4   : > { %v413_v53 = vsub.f32 %v399_v28, %v409_v52 }
 0x2a6   : > { %v415_v54 = vmul.f32 1.442695, %v413_v53 }
 0x2a7   : > { %v412_v55 = vpop.xlane.xlu0 %411 }
 0x2a8   : > { %v414_v56 = vsub.f32 %v402_v31, %v412_v55  ;;  %1204 = vpow2.f32 %v415_v54 }
 0x2aa   : > { %v417_v57 = vmul.f32 1.442695, %v414_v56 }
 0x2ab   : > { %v531_v58 = vpop.xlane.xlu0 %530 }
 0x2ac   : > { %1206 = vpow2.f32 %v417_v57  ;;  %v535_v59 = vsub.f32 %v522_v34, %v531_v58  ;;  %v1202_v58 = vld [vmem:[%s1457_s3 + $0x8] sm:$0xff]  }
 0x2ad   : > { %1154 = vmatpush3.bf16.msra.mxu1 %v1202_v58 }
 0x2ae   : > { %v537_v60 = vmul.f32 1.442695, %v535_v59  ;;  %1155 = vmatprep.subr.bf16.mxu1 %v1248_v1 }
 0x2af   : > { %v534_v61 = vpop.xlane.xlu1 %533 }
 0x2b0   : > { %1208 = vpow2.f32 %v537_v60  ;;  %v536_v62 = vsub.f32 %v525_v37, %v534_v61 }
 0x2b2   : > { %v539_v63 = vmul.f32 1.442695, %v536_v62 }
 0x2b3   : > { %v652_v0 = vpop.xlane.xlu0 %651  ;;  %v549_v10 = vpop.permute.xlu1 %548 }
 0x2b4   : > { %1210 = vpow2.f32 %v539_v63  ;;  %v656_v2 = vsub.f32 %v643_v40, %v652_v0 }
 0x2b5   : > { %v1205_v7 = vpop.eup %1204 }
 0x2b6   : > { %v658_v5 = vmul.f32 1.442695, %v656_v2  ;;  %v419_v36 = vsel %vm406_vm3, %v1205_v7, 0.0 }
 0x2b7   : > { %v427_v6 = vpop.permute.xlu0 %426 }
 0x2b8   : > { %1212 = vpow2.f32 %v658_v5  ;;  %1112 = vmatpush3.bf16.msra.mxu0 %v427_v6  ;;  %v1203_v5 = vld [vmem:[%s1457_s3] sm:$0xff]  }
 0x2b9   : > { %v1207_v8 = vpop.eup %1206  ;;  %1123 = vmatprep.subr.bf16.mxu0 %v1248_v1  ;;  %1156 = vmatpush3.bf16.msra.mxu1 %v1203_v5  ;;  %v1070_v5 = vld [vmem:[%s1460_s6] ss:$0 sm:$0xff] }
 0x2ba   : > { %v425_v9 = vpack.c.bf16 %v1207_v8, %v1205_v7  ;;  %v422_v38 = vsel %vm406_vm3, %v1207_v8, 0.0 }
 0x2bc   : > { %1114 = vmatmul.mubr.msk.bf16.vlgmr.msra.gmra.mxu0 %vm406_vm3, %v425_v9 }
 0x2bd   : > { %v1209_v11 = vpop.eup %1208  ;;  %1124 = vmatpush3.bf16.msra.mxu0 %v549_v10  ;;  %1125 = vmatprep.mubr.msk.bf16.mxu0 %vm1249_vm0, %v1248_v1 }
 0x2be   : > { %v541_v12 = vsel %vm406_vm3, %v1209_v11, 0.0  ;;  %1135 = vmatprep.subr.bf16.mxu0 %v1248_v1 }
 0x2bf   : > { %542 = vadd.xlane.f32.xlu1 %v541_v12 }
 0x2c1   : > { %v1211_v13 = vpop.eup %1210 }
 0x2c2   : > { %v544_v14 = vsel %vm406_vm3, %v1211_v13, 0.0  ;;  %v547_v15 = vpack.c.bf16 %v1211_v13, %v1209_v11 }
 0x2c3   : > { %545 = vadd.xlane.f32.xlu0 %v544_v14 }
 0x2c4   : > { %1126 = vmatmul.mubr.msk.bf16.vlgmr.msra.gmra.mxu0 %vm406_vm3, %v547_v15 }
 0x2c5   : > { %v1213_v16 = vpop.eup %1212  ;;  %1137 = vmatprep.mubr.msk.bf16.mxu0 %vm1249_vm0, %v1248_v1 }
 0x2c6   : > { %v662_v17 = vsel %vm406_vm3, %v1213_v16, 0.0 }
 0x2c7   : > { %663 = vadd.xlane.f32.xlu0 %v662_v17 }
 0x2e4   : > { %v655_v18 = vpop.xlane.xlu1 %654 }
 0x2e5   : > { %v657_v19 = vsub.f32 %v1377_v43, %v655_v18 }
 0x2e7   : > { %v660_v20 = vmul.f32 1.442695, %v657_v19 }
 0x2e8   : > { %v773_v21 = vpop.xlane.xlu0 %772  ;;  %v776_v22 = vpop.xlane.xlu1 %775 }
 0x2e9   : > { %1214 = vpow2.f32 %v660_v20  ;;  %v777_v23 = vsub.f32 %v1379_v45, %v773_v21  ;;  %v778_v24 = vsub.f32 %v1381_v47, %v776_v22 }
 0x2eb   : > { %v779_v25 = vmul.f32 1.442695, %v777_v23  ;;  %v781_v26 = vmul.f32 1.442695, %v778_v24 }
 0x2ec   : > { %v670_v27 = vpop.permute.xlu1 %669  ;;  %v791_v31 = vpop.permute.xlu0 %790 }
 0x2ed   : > { %1216 = vpow2.f32 %v779_v25  ;;  %1136 = vmatpush3.bf16.msra.mxu0 %v670_v27 }
 0x2ee   : > { %1218 = vpow2.f32 %v781_v26  ;;  %1147 = vmatprep.subr.bf16.mxu0 %v1248_v1 }
 0x2f6   : > { %v1215_v28 = vpop.eup %1214 }
 0x2f7   : > { %v665_v29 = vsel %vm406_vm3, %v1215_v28, 0.0  ;;  %v668_v30 = vpack.c.bf16 %v1215_v28, %v1213_v16 }
 0x2f8   : > { %666 = vadd.xlane.f32.xlu1 %v665_v29 }
 0x2f9   : > { %1138 = vmatmul.mubr.msk.bf16.vlgmr.msra.gmra.mxu0 %vm406_vm3, %v668_v30 }
 0x2fa   : > { %v1217_v32 = vpop.eup %1216  ;;  %1148 = vmatpush3.bf16.msra.mxu0 %v791_v31  ;;  %1149 = vmatprep.mubr.msk.bf16.mxu0 %vm1249_vm0, %v1248_v1 }
 0x2fb   : > { %v1219_v33 = vpop.eup %1218  ;;  %v783_v34 = vsel %vm406_vm3, %v1217_v32, 0.0 }
 0x2fc   : > { %784 = vadd.xlane.f32.xlu0 %v783_v34  ;;  %v786_v35 = vsel %vm406_vm3, %v1219_v33, 0.0  ;;  %v789_v37 = vpack.c.bf16 %v1219_v33, %v1217_v32 }
 0x2fd   : > { %787 = vadd.xlane.f32.xlu1 %v786_v35 }
 0x300   : > { %420 = vadd.xlane.f32.xlu0 %v419_v36 }
 0x301   : > { %423 = vadd.xlane.f32.xlu1 %v422_v38  ;;  %1150 = vmatmul.mubr.msk.bf16.vlgmr.msra.gmra.mxu0 %vm406_vm3, %v789_v37  ;;  %v1065_v38 = vld [vmem:[%s1458_s4] ss:$0 sm:$0xff] }
 0x348   : > { %v543_v39 = vpop.xlane.xlu1 %542 }
 0x349   : > { %1220 = vrcp.f32 %v543_v39 }
 0x34c   : > { %v546_v40 = vpop.xlane.xlu0 %545 }
 0x34d   : > { %1222 = vrcp.f32 %v546_v40 }
 0x350   : > { %v664_v54 = vpop.xlane.xlu0 %663 }
 0x351   : > { %1224 = vrcp.f32 %v664_v54 }
 0x356   : > { %v1221_v47 = vpop.eup %1220 }
 0x35a   : > { %v1223_v48 = vpop.eup %1222 }
 0x35e   : > { %v1225_v61 = vpop.eup %1224 }
 0x37c   : > { %v466_v41 = vpop.f32.mrf.mxu0 }
 0x37e   : > { %v1115_v42 = vpop.f32.mrf.mxu0 }
 0x380   : > { %v469_v43 = vpop.f32.mrf.mxu0 }
 0x381   : > { %v667_v55 = vpop.xlane.xlu1 %666 }
 0x382   : > { %v1116_v44 = vpop.f32.mrf.mxu0  ;;  %1226 = vrcp.f32 %v667_v55 }
 0x384   : > { %v588_v45 = vpop.f32.mrf.mxu0 }
 0x385   : > { %v596_v50 = vmul.f32 %v1221_v47, %v588_v45  ;;  %v785_v56 = vpop.xlane.xlu0 %784 }
 0x386   : > { %v1127_v46 = vpop.f32.mrf.mxu0  ;;  %v788_v57 = vpop.xlane.xlu1 %787  ;;  %1228 = vrcp.f32 %v785_v56 }
 0x387   : > { %1230 = vrcp.f32 %v788_v57 }
 0x388   : > { %v591_v49 = vpop.f32.mrf.mxu0 }
 0x389   : > { %v598_v51 = vmul.f32 %v1223_v48, %v591_v49  ;;  %v421_v16 = vpop.xlane.xlu0 %420 }
 0x38a   : > { %v1128_v52 = vpop.f32.mrf.mxu0  ;;  %v424_v17 = vpop.xlane.xlu1 %423  ;;  %1232 = vrcp.f32 %v421_v16 }
 0x38b   : > { %v1185_v53 = vpack.i.bf16 %v598_v51, %v596_v50  ;;  %1234 = vrcp.f32 %v424_v17 }
 0x38d   : > { %1186 = vrot.lane.b32.xlu0 %v1185_v53, %s1261_s26 }
 0x38f   : > { %v1227_v62 = vpop.eup %1226 }
 0x393   : > { %v1229_v10 = vpop.eup %1228 }
 0x394   : > { %v1231_v11 = vpop.eup %1230 }
 0x397   : > { %v1233_v19 = vpop.eup %1232 }
 0x398   : > { %v1235_v21 = vpop.eup %1234  ;;  %v474_v26 = vmul.f32 %v1233_v19, %v466_v41 }
 0x399   : > { %v476_v27 = vmul.f32 %v1235_v21, %v469_v43 }
 0x3b9   : > { %v709_v59 = vpop.f32.mrf.mxu0 }
 0x3ba   : > { %v717_v0 = vmul.f32 %v1225_v61, %v709_v59 }
 0x3bb   : > { %v1139_v60 = vpop.f32.mrf.mxu0 }
 0x3bd   : > { %v712_v63 = vpop.f32.mrf.mxu0 }
 0x3be   : > { %v719_v2 = vmul.f32 %v1227_v62, %v712_v63 }
 0x3bf   : > { %v1140_v6 = vpop.f32.mrf.mxu0 }
 0x3c0   : > { %v1190_v7 = vpack.i.bf16 %v719_v2, %v717_v0  ;;  %v1069_v0 = vld [vmem:[%s1459_s5] ss:$0 sm:$0xff] }
 0x3c1   : > { %v830_v8 = vpop.f32.mrf.mxu0 }
 0x3c2   : > { %1191 = vrot.lane.b32.xlu1 %v1190_v7, %s1262_s9  ;;  %v838_v12 = vmul.f32 %v1229_v10, %v830_v8 }
 0x3c3   : > { %v1151_v9 = vpop.f32.mrf.mxu0 }
 0x3c5   : > { %v833_v1 = vpop.f32.mrf.mxu0 }
 0x3c6   : > { %v840_v13 = vmul.f32 %v1231_v11, %v833_v1 }
 0x3c7   : > { %v1152_v14 = vpop.f32.mrf.mxu0 }
 0x3c8   : > { %v1195_v15 = vpack.i.bf16 %v840_v13, %v838_v12 }
 0x3ca   : > { %1196 = vrot.lane.b32.xlu1 %v1195_v15, %s1263_s10 }
 0x3ff   : > { %v1187_v18 = vpop.permute.xlu0 %1186 }
 0x400   : > { %v1189_v22 = vunpack.i.h.bf16 %v1187_v18  ;;  %v1188_v23 = vunpack.i.l.bf16 %v1187_v18 }
 0x402   : > { %v866_v29 = vsel %vm358_vm2, %v476_v27, %v1189_v22  ;;  %v865_v30 = vsel %vm358_vm2, %v474_v26, %v1188_v23 }
 0x434   : > { %v1192_v20 = vpop.permute.xlu1 %1191 }
 0x435   : > { %v1194_v24 = vunpack.i.h.bf16 %v1192_v20  ;;  %v1193_v25 = vunpack.i.l.bf16 %v1192_v20 }
 0x437   : > { %v868_v33 = vsel %vm406_vm3, %v866_v29, %v1194_v24  ;;  %v867_v34 = vsel %vm406_vm3, %v865_v30, %v1193_v25 }
 0x43c   : > { %v1197_v28 = vpop.permute.xlu1 %1196 }
 0x43d   : > { %v1199_v31 = vunpack.i.h.bf16 %v1197_v28  ;;  %v1198_v32 = vunpack.i.l.bf16 %v1197_v28 }
 0x43f   : > { %v871_v35 = vsel %vm869_vm4, %v868_v33, %v1199_v31  ;;  %v870_v36 = vsel %vm869_vm4, %v867_v34, %v1198_v32 }
 0x440   : > { %v872_v37 = vpack.c.bf16 %v871_v35, %v870_v36 }
 0x442   : > { %1158 = vmatmul.mubr.msk.bf16.vlgmr.msra.gmra.mxu1 %vm306_vm1, %v872_v37 }
 0x502   : > { %v933_v39 = vpop.f32.mrf.mxu1 }
 0x503   : > { %v934_v40 = vadd.f32 %v1065_v38, %v933_v39 }
 0x504   : > { %v1159_v41 = vpop.f32.mrf.mxu1 }
 0x505   : > { %v940_v42 = vadd.f32 %v934_v40, %v1334_v3 }
 0x506   : > { %v936_v43 = vpop.f32.mrf.mxu1 }
 0x507   : > { %v937_v44 = vadd.f32 %v1065_v38, %v936_v43  ;;  %v944_v45 = vsel %vm306_vm1, %v940_v42, 0.0 }
 0x508   : > { %945 = vadd.xlane.f32.xlu0 %v944_v45  ;;  %v1160_v46 = vpop.f32.mrf.mxu1 }
 0x509   : > { %v941_v47 = vadd.f32 %v937_v44, %v1336_v4 }
 0x50b   : > { %v947_v48 = vsel %vm306_vm1, %v941_v47, 0.0 }
 0x50c   : > { %948 = vadd.xlane.f32.xlu1 %v947_v48 }
 0x591   : > { %v946_v49 = vpop.xlane.xlu0 %945 }
 0x592   : > { %v951_v50 = vmul.f32 0.03125, %v946_v49 }
 0x594   : > { %v953_v51 = vsub.f32 %v940_v42, %v951_v50 }
 0x595   : > { %v949_v52 = vpop.xlane.xlu1 %948 }
 0x596   : > { %v952_v53 = vmul.f32 0.03125, %v949_v52  ;;  %v955_v54 = vmul.f32 %v953_v51, %v953_v51 }
 0x598   : > { %v954_v55 = vsub.f32 %v941_v47, %v952_v53  ;;  %v957_v3 = vsel %vm306_vm1, %v955_v54, 0.0 }
 0x599   : > { %958 = vadd.xlane.f32.xlu0 %v957_v3 }
 0x59a   : > { %v956_v56 = vmul.f32 %v954_v55, %v954_v55 }
 0x59c   : > { %v960_v57 = vsel %vm306_vm1, %v956_v56, 0.0 }
 0x59d   : > { %961 = vadd.xlane.f32.xlu0 %v960_v57 }
 0x622   : > { %v959_v58 = vpop.xlane.xlu0 %958 }
 0x623   : > { %v963_v4 = vmul.f32 0.03125, %v959_v58 }
 0x625   : > { %v965_v59 = vadd.f32 1e-05, %v963_v4 }
 0x626   : > { %v962_v60 = vpop.xlane.xlu0 %961 }
 0x627   : > { %1236 = vrsqrt.f32 %v965_v59  ;;  %v964_v61 = vmul.f32 0.03125, %v962_v60 }
 0x629   : > { %v966_v62 = vadd.f32 1e-05, %v964_v61 }
 0x62b   : > { %1238 = vrsqrt.f32 %v966_v62 }
 0x634   : > { %v1237_v63 = vpop.eup %1236 }
 0x635   : > { %v969_v2 = vmul.f32 %v1237_v63, %v953_v51 }
 0x637   : > { %v977_v6 = vmul.f32 %v1069_v0, %v969_v2 }
 0x638   : > { %v1239_v7 = vpop.eup %1238 }
 0x639   : > { %v985_v8 = vadd.f32 %v1070_v5, %v977_v6  ;;  %v970_v9 = vmul.f32 %v1239_v7, %v954_v55 }
 0x63b   : > { %987 = vst.msk [vmem:[%s278_s19] sm:$0xff] %vm306_vm1, %v985_v8  ;;  %v978_v10 = vmul.f32 %v1069_v0, %v970_v9 }
 0x63d   : > { %v986_v11 = vadd.f32 %v1070_v5, %v978_v10 }
 0x63f   : > { %988 = vst.msk [vmem:[%s278_s19 + $0x8] sm:$0xff] %vm306_vm1, %v986_v11 }
 0x640 PF: > { %s17_s24 = sadd.s32 1, %s1246_s24  }
 0x641   : > { %p14_p4 = scmp.ge.s32.totalorder %s17_s24, 4  }
 0x643   :  { %16 = sbr.rel (!%p14_p4) target bundleno = 1 (0x1), region = 78 }

// kernel: transformer_autoencoder_forward.11
= control target key start
LH: loop header
LB: loop body
LE: loop exit
PB: predicated region body
PF: predicated region fallthrough
CT: control target
= control target key end

     0   :  { %s372_s12 = smov 0   ;;  %s398_s0 = inlined_call_operand.vmem [shape: f32[32,32], index: 0, kind: input, shape index: {}]   ;;  %s399_s1 = inlined_call_operand.vmem [shape: bf16[32,128], index: 1, kind: input, shape index: {}]   ;;  %s400_s2 = inlined_call_operand.vmem [shape: f32[1,128], index: 2, kind: input, shape index: {}]   ;;  %s401_s3 = inlined_call_operand.vmem [shape: f32[32,128], index: 3, kind: output, shape index: {}]  }
   0x1 LB: > { %s304_s13 = sadd.s32 4294967295, %s348_s12   ;;  %p308_p0 = scmp.ge.s32.totalorder %s348_s12, 1  ;;  %s348_s12 = sphi %s372_s12, %s13_s12  }
   0x2   : > { %p138_p1 = scmp.lt.s32.totalorder %s348_s12, 3 }
   0x4   : > { %p139_p2 = pnand %p308_p0, %p138_p1 }
   0x5   : > { %s309_s18 = sshll.u32 (!%p139_p2), %s304_s13, 1 }
   0x6   : > { %142 = sbr.rel (%p139_p2) target bundleno = 220 (0xdc), region = 32  ;;  %p163_p3 = scmp.lt.s32.totalorder (!%p139_p2), %s309_s18, 3 }
   0xb   : > { %v340_v0 = vld [vmem:[%s399_s1 + $0x8] sm:$0xff]   ;;  %v350_v1 = vmov 0.0   ;;  %v341_v2 = vld [vmem:[%s399_s1] sm:$0xff]   ;;  %vm351_vm0 = vmmov 0   ;;  %s403_s18 = smov (!%p163_p3, %s309_s18), 3  ;;  %vm201_vm1 = vcmask 261120  }
   0xc   : > { %322 = vmatprep.subr.bf16.mxu0 %v350_v1  ;;  %326 = vmatprep.mubr.msk.bf16.mxu0 %vm351_vm0, %v350_v1  ;;  %s310_s19 = sshll.u32 %s403_s18, 3  ;;  %v313_v6 = vld [vmem:[%s400_s2] ss:$0 sm:$0xff] }
   0xd   : > { %323 = vmatpush3.bf16.msra.mxu0 %v340_v0  ;;  %s166_s22 = scalar_lea.vmem %s398_s0, %s310_s19  ;;  %s172_s27 = scalar_lea.vmem %s401_s3, %s310_s19 }
   0xe   : > { %324 = vmatprep.subr.bf16.mxu0 %v350_v1  ;;  %v175_v3 = vld [vmem:[%s166_s22] sm:$0xff]  ;;  %v176_v4 = vld [vmem:[%s166_s22 + $0x8] sm:$0xff] }
   0xf   : > { %v177_v5 = vpack.c.bf16 %v176_v4, %v175_v3 }
  0x11   : > { %325 = vmatpush3.bf16.msra.mxu0 %v341_v2 }
  0x14   : > { %327 = vmatmul.mubr.msk.bf16.vlgmr.msra.gmra.mxu0 %vm201_vm1, %v177_v5 }
  0xd4   : > { %v239_v7 = vpop.f32.mrf.mxu0 }
  0xd5   : > { %v240_v8 = vadd.f32 %v313_v6, %v239_v7 }
  0xd6   : > { %v328_v9 = vpop.f32.mrf.mxu0 }
  0xd7   : > { %246 = vst [vmem:[%s172_s27] sm:$0xff] %v240_v8 }
  0xd8   : > { %v242_v10 = vpop.f32.mrf.mxu0 }
  0xd9   : > { %v243_v11 = vadd.f32 %v313_v6, %v242_v10 }
  0xda   : > { %v329_v12 = vpop.f32.mrf.mxu0 }
  0xdb   : > { %247 = vst [vmem:[%s172_s27 + $0x8] sm:$0xff] %v243_v11 }
  0xdc PF: > { %s13_s12 = sadd.s32 1, %s348_s12  }
  0xdd   : > { %p10_p4 = scmp.ge.s32.totalorder %s13_s12, 4  }
  0xdf   :  { %12 = sbr.rel (!%p10_p4) target bundleno = 1 (0x1), region = 62 }

// kernel: transformer_autoencoder_forward.8
= control target key start
LH: loop header
LB: loop body
LE: loop exit
PB: predicated region body
PF: predicated region fallthrough
CT: control target
= control target key end

     0   :  { %s669_s24 = smov 0   ;;  %s730_s0 = inlined_call_operand.vmem [shape: f32[32,32], index: 0, kind: input, shape index: {}]   ;;  %s731_s1 = inlined_call_operand.vmem [shape: bf16[32,64], index: 1, kind: input, shape index: {}]   ;;  %s732_s2 = inlined_call_operand.vmem [shape: f32[1,64], index: 2, kind: input, shape index: {}]   ;;  %s733_s3 = inlined_call_operand.vmem [shape: bf16[64,32], index: 3, kind: input, shape index: {}]   ;;  %s734_s4 = inlined_call_operand.vmem [shape: f32[1,32], index: 4, kind: input, shape index: {}]   ;;  %s735_s5 = inlined_call_operand.vmem [shape: f32[1,32], index: 5, kind: input, shape index: {}]   ;;  %s736_s6 = inlined_call_operand.vmem [shape: f32[1,32], index: 6, kind: input, shape index: {}]   ;;  %s737_s7 = inlined_call_operand.vmem [shape: f32[32,32], index: 7, kind: output, shape index: {}]  }
   0x1 LB: > { %s548_s25 = sadd.s32 4294967295, %s625_s24   ;;  %p552_p0 = scmp.ge.s32.totalorder %s625_s24, 1  ;;  %s625_s24 = sphi %s669_s24, %s17_s24  }
   0x2   : > { %p238_p1 = scmp.lt.s32.totalorder %s625_s24, 3 }
   0x4   : > { %p239_p2 = pnand %p552_p0, %p238_p1 }
   0x5   : > { %s553_s30 = sshll.u32 (!%p239_p2), %s548_s25, 1 }
   0x6   : > { %242 = sbr.rel (%p239_p2) target bundleno = 733 (0x2dd), region = 48  ;;  %p271_p3 = scmp.lt.s32.totalorder (!%p239_p2), %s553_s30, 3 }
   0xb   : > { %v609_v0 = vld [vmem:[%s731_s1 + $0x8] sm:$0xff]   ;;  %v627_v1 = vmov 0.0   ;;  %v610_v2 = vld [vmem:[%s731_s1] sm:$0xff]   ;;  %vm628_vm0 = vmmov 0   ;;  %v611_v3 = vld [vmem:[%s733_s3 + $0x18] sm:$0xff]   ;;  %s739_s30 = smov (!%p271_p3, %s553_s30), 3 }
   0xc   : > { %579 = vmatprep.subr.bf16.mxu0 %v627_v1  ;;  %587 = vmatprep.subr.bf16.mxu1 %v627_v1  ;;  %s554_s10 = sshll.u32 %s739_s30, 3  ;;  %vm309_vm1 = vcmask 261120   ;;  %v612_v7 = vld [vmem:[%s733_s3 + $0x10] sm:$0xff]   ;;  %v613_v8 = vld [vmem:[%s733_s3 + $0x8] sm:$0xff]   ;;  %v614_v9 = vld [vmem:[%s733_s3] sm:$0xff]   ;;  %vm389_vm2 = vcmask 523264  }
   0xd   : > { %580 = vmatpush3.bf16.msra.mxu0 %v609_v0  ;;  %583 = vmatprep.mubr.msk.bf16.mxu0 %vm628_vm0, %v627_v1  ;;  %s274_s13 = scalar_lea.vmem %s730_s0, %s554_s10  ;;  %v557_v10 = vld [vmem:[%s732_s2] ss:$0 sm:$0xff]  ;;  %s280_s9 = scalar_lea.vmem %s737_s7, %s554_s10 }
   0xe   : > { %581 = vmatprep.subr.bf16.mxu0 %v627_v1  ;;  %595 = vmatprep.mubr.msk.bf16.mxu1 %vm628_vm0, %v627_v1  ;;  %v283_v4 = vld [vmem:[%s274_s13] sm:$0xff]  ;;  %v284_v5 = vld [vmem:[%s274_s13 + $0x8] sm:$0xff] }
   0xf   : > { %588 = vmatpush3.bf16.msra.mxu1 %v611_v3  ;;  %v285_v6 = vpack.c.bf16 %v284_v5, %v283_v4  ;;  %v566_v21 = vld [vmem:[%s734_s4] ss:$0 sm:$0xff] }
  0x10   : > { %589 = vmatprep.subr.bf16.mxu1 %v627_v1  ;;  %v567_v48 = vld [vmem:[%s735_s5] ss:$0 sm:$0xff] }
  0x11   : > { %582 = vmatpush3.bf16.msra.mxu0 %v610_v2  ;;  %v568_v50 = vld [vmem:[%s736_s6] ss:$0 sm:$0xff] }
  0x13   : > { %590 = vmatpush3.bf16.msra.mxu1 %v612_v7 }
  0x14   : > { %584 = vmatmul.mubr.msk.bf16.vlgmr.msra.gmra.mxu0 %vm309_vm1, %v285_v6  ;;  %591 = vmatprep.subr.bf16.mxu1 %v627_v1 }
  0x17   : > { %592 = vmatpush3.bf16.msra.mxu1 %v613_v8 }
  0x18   : > { %593 = vmatprep.subr.bf16.mxu1 %v627_v1 }
  0x1b   : > { %594 = vmatpush3.bf16.msra.mxu1 %v614_v9 }
  0xd4   : > { %v347_v11 = vpop.f32.mrf.mxu0 }
  0xd5   : > { %v348_v13 = vadd.f32 %v557_v10, %v347_v11 }
  0xd6   : > { %v585_v12 = vpop.f32.mrf.mxu0 }
  0xd7   : > { %v354_v17 = vmax.f32 %v348_v13, 0.0 }
  0xd8   : > { %v350_v14 = vpop.f32.mrf.mxu0 }
  0xd9   : > { %v351_v15 = vadd.f32 %v557_v10, %v350_v14 }
  0xda   : > { %v586_v16 = vpop.f32.mrf.mxu0 }
  0xdb   : > { %v355_v18 = vmax.f32 %v351_v15, 0.0 }
  0xdd   : > { %v356_v19 = vpack.c.bf16 %v355_v18, %v354_v17 }
  0xdf   : > { %596 = vmatmul.mubr.msk.bf16.vlgmr.msra.gmra.mxu1 %vm389_vm2, %v356_v19 }
 0x19f   : > { %v427_v20 = vpop.f32.mrf.mxu1 }
 0x1a0   : > { %v434_v22 = vadd.f32 %v427_v20, %v283_v4 }
 0x1a1   : > { %v597_v23 = vpop.f32.mrf.mxu1 }
 0x1a2   : > { %v443_v24 = vadd.f32 %v566_v21, %v434_v22 }
 0x1a3   : > { %v430_v25 = vpop.f32.mrf.mxu1 }
 0x1a4   : > { %v435_v26 = vadd.f32 %v430_v25, %v284_v5  ;;  %v447_v27 = vsel %vm309_vm1, %v443_v24, 0.0 }
 0x1a5   : > { %448 = vadd.xlane.f32.xlu0 %v447_v27  ;;  %v598_v28 = vpop.f32.mrf.mxu1 }
 0x1a6   : > { %v444_v29 = vadd.f32 %v566_v21, %v435_v26 }
 0x1a8   : > { %v450_v30 = vsel %vm309_vm1, %v444_v29, 0.0 }
 0x1a9   : > { %451 = vadd.xlane.f32.xlu0 %v450_v30 }
 0x22e   : > { %v449_v31 = vpop.xlane.xlu0 %448 }
 0x22f   : > { %v454_v32 = vmul.f32 0.03125, %v449_v31 }
 0x231   : > { %v456_v33 = vsub.f32 %v443_v24, %v454_v32 }
 0x232   : > { %v452_v34 = vpop.xlane.xlu0 %451 }
 0x233   : > { %v455_v35 = vmul.f32 0.03125, %v452_v34  ;;  %v458_v36 = vmul.f32 %v456_v33, %v456_v33 }
 0x235   : > { %v457_v37 = vsub.f32 %v444_v29, %v455_v35  ;;  %v460_v38 = vsel %vm309_vm1, %v458_v36, 0.0 }
 0x236   : > { %461 = vadd.xlane.f32.xlu1 %v460_v38 }
 0x237   : > { %v459_v39 = vmul.f32 %v457_v37, %v457_v37 }
 0x239   : > { %v463_v40 = vsel %vm309_vm1, %v459_v39, 0.0 }
 0x23a   : > { %464 = vadd.xlane.f32.xlu1 %v463_v40 }
 0x2bf   : > { %v462_v41 = vpop.xlane.xlu1 %461 }
 0x2c0   : > { %v466_v42 = vmul.f32 0.03125, %v462_v41 }
 0x2c2   : > { %v468_v43 = vadd.f32 1e-05, %v466_v42 }
 0x2c3   : > { %v465_v44 = vpop.xlane.xlu1 %464 }
 0x2c4   : > { %615 = vrsqrt.f32 %v468_v43  ;;  %v467_v45 = vmul.f32 0.03125, %v465_v44 }
 0x2c6   : > { %v469_v46 = vadd.f32 1e-05, %v467_v45 }
 0x2c8   : > { %617 = vrsqrt.f32 %v469_v46 }
 0x2d1   : > { %v616_v47 = vpop.eup %615 }
 0x2d2   : > { %v472_v49 = vmul.f32 %v616_v47, %v456_v33 }
 0x2d4   : > { %v480_v51 = vmul.f32 %v567_v48, %v472_v49 }
 0x2d5   : > { %v618_v52 = vpop.eup %617 }
 0x2d6   : > { %v488_v53 = vadd.f32 %v568_v50, %v480_v51  ;;  %v473_v54 = vmul.f32 %v618_v52, %v457_v37 }
 0x2d8   : > { %490 = vst.msk [vmem:[%s280_s9] sm:$0xff] %vm309_vm1, %v488_v53  ;;  %v481_v55 = vmul.f32 %v567_v48, %v473_v54 }
 0x2da   : > { %v489_v56 = vadd.f32 %v568_v50, %v481_v55 }
 0x2dc   : > { %491 = vst.msk [vmem:[%s280_s9 + $0x8] sm:$0xff] %vm309_vm1, %v489_v56 }
 0x2dd PF: > { %s17_s24 = sadd.s32 1, %s625_s24  }
 0x2de   : > { %p14_p4 = scmp.ge.s32.totalorder %s17_s24, 4  }
 0x2e0   :  { %16 = sbr.rel (!%p14_p4) target bundleno = 1 (0x1), region = 78 }

</bundles_post_ra>
